<compile_context>
chip_gen: v7x
topology: tpu7x:2x2x1
jax: 0.10.0
libtpu: 0.0.40
codegen_flags: <defaults>
</compile_context>

<pallas_src>
import functools

import jax
import jax.numpy as jnp
from jax.experimental import pallas as pl
from jax.experimental.pallas import tpu as pltpu


_VMEM_BUDGET = 20 * 1024 * 1024          # stay well under the 32 MiB default
_TILE_CANDIDATES = (1024, 512, 256, 128, 64, 32, 16, 8)


def _largest_divisor_tile(M, cap):
    for t in _TILE_CANDIDATES:
        if t <= cap and M % t == 0:
            return t
    return None


# ----------------------------------------------------------------------------
# Generic "multi-input / multi-output matmul + bias" kernel:
#     out_j = sum_i x_i @ W_ij + b_j
# Used for the per-layer gate precompute (both directions at once) and the
# final FC layer.
# ----------------------------------------------------------------------------
def _make_matmul_kernel(n_in, n_out, stack_outputs):
    def kernel(*refs):
        xs = refs[:n_in]
        ws = refs[n_in:n_in + n_in * n_out]
        bs = refs[n_in + n_in * n_out:n_in + n_in * n_out + n_out]
        outs = refs[n_in + n_in * n_out + n_out:]
        # Cast each x tile to the matmul dtype ONCE per grid step (hoisted
        # out of the j loop -- review item).
        xv = [xs[i][...].astype(ws[i * n_out].dtype) for i in range(n_in)]
        for j in range(n_out):
            acc = jnp.asarray(bs[j][...], jnp.float32)          # (1, tn)
            for i in range(n_in):
                acc = acc + jnp.dot(xv[i], ws[i * n_out + j][...],
                                    preferred_element_type=jnp.float32)
            if stack_outputs:
                outs[0][j] = acc.astype(outs[0].dtype)
            else:
                outs[j][...] = acc.astype(outs[j].dtype)
    return kernel


def fused_matmul(xs, ws, bs, out_dims, *, matmul_dtype=jnp.bfloat16,
                 out_dtype=jnp.float32, stack_outputs=False):
    """out_j = sum_i x_i @ ws[i][j] + bs[j], all in one pallas_call.

    xs entries: 2-D (M, D_i) arrays, OR pairs (arr, lead) where arr is
    (L, M, D_i) and `lead` selects the leading slice (lets callers read
    direction-stacked activations without materialising a slice copy).
    ws[i][j]: (D_i, out_dims[j]).  bs[j]: (out_dims[j],).
    Returns a list of (M, out_dims[j]) arrays of dtype out_dtype, or a single
    stacked (n_out, M, od) array when stack_outputs=True.
    """
    n_in, n_out = len(xs), len(bs)
    od = out_dims[0]
    assert all(o == od for o in out_dims), "column tiling assumes equal dims"

    # Normalise inputs to (array, lead_index_or_None).
    norm = []
    for x in xs:
        if isinstance(x, tuple):
            arr, lead = x
            norm.append((arr, int(lead)))
        else:
            norm.append((x, None))
    M = norm[0][0].shape[-2]
    in_dims = [a.shape[-1] for a, _ in norm]
    mm_b = jnp.dtype(matmul_dtype).itemsize
    out_b = jnp.dtype(out_dtype).itemsize

    # --- column tile: keep the (grid-invariant, double-buffered) weight
    #     blocks within the VMEM budget -------------------------------------
    def weight_vmem(tn_):
        return 2 * (n_out * sum(d * tn_ for d in in_dims) * mm_b
                    + n_out * tn_ * 4)

    tn = od
    if weight_vmem(tn) > _VMEM_BUDGET // 2:
        for cand in (1024, 512, 256, 128):
            if cand < od and od % cand == 0:
                tn = cand
                if weight_vmem(tn) <= _VMEM_BUDGET // 2:
                    break

    # --- row tile: sized from the remaining budget; always a multiple of 8
    #     (or the full M for tiny M); pad awkward M instead of one huge block.
    per_row = 2 * (sum(in_dims) * 4 + n_out * tn * out_b)
    cap = max(8, (_VMEM_BUDGET - weight_vmem(tn)) // max(per_row, 1))
    tm = _largest_divisor_tile(M, cap)
    M_pad = M
    if tm is None:
        if M <= 8:
            tm = M
        else:
            base = 256 if M > 256 else 8
            M_pad = -(-M // base) * base
            tm = _largest_divisor_tile(M_pad, cap) or min(base, M_pad)
    assert od % tn == 0 and M_pad % tm == 0

    # Zero-pad rows if needed (pad rows only produce bias rows; sliced off).
    if M_pad != M:
        padded = []
        for a, lead in norm:
            a2 = a if lead is None else a[lead]
            padded.append((jnp.pad(a2, ((0, M_pad - M), (0, 0))), None))
        norm = padded

    flat_ws = [jnp.asarray(ws[i][j], matmul_dtype)
               for i in range(n_in) for j in range(n_out)]
    bs2d = [jnp.asarray(b, jnp.float32).reshape(1, -1) for b in bs]

    # Columns outer / rows inner: the weight column-block is DMA'd once per
    # column sweep, x tiles are re-read per column block (cheaper overall).
    grid = (od // tn, M_pad // tm)

    in_specs = []
    for (a, lead), d in zip(norm, in_dims):
        if lead is None:
            in_specs.append(pl.BlockSpec((tm, d), lambda n, m: (m, 0)))
        else:
            in_specs.append(pl.BlockSpec((None, tm, d),
                                         lambda n, m, l=lead: (l, m, 0)))
    in_specs += [pl.BlockSpec((w.shape[0], tn), lambda n, m: (0, n))
                 for w in flat_ws]
    in_specs += [pl.BlockSpec((1, tn), lambda n, m: (0, n)) for _ in bs2d]

    if stack_outputs:
        out_specs = pl.BlockSpec((n_out, tm, tn), lambda n, m: (0, m, n))
        out_shape = jax.ShapeDtypeStruct((n_out, M_pad, od), out_dtype)
    else:
        out_specs = [pl.BlockSpec((tm, tn), lambda n, m: (m, n))
                     for _ in range(n_out)]
        out_shape = [jax.ShapeDtypeStruct((M_pad, od), out_dtype)
                     for _ in range(n_out)]

    outs = pl.pallas_call(
        _make_matmul_kernel(n_in, n_out, stack_outputs),
        out_shape=out_shape,
        grid_spec=pltpu.PrefetchScalarGridSpec(
            num_scalar_prefetch=0,
            grid=grid,
            in_specs=in_specs,
            out_specs=out_specs,
        ),
        compiler_params=pltpu.CompilerParams(
            dimension_semantics=("parallel", "parallel")),
    )(*[a for a, _ in norm], *flat_ws, *bs2d)

    if stack_outputs:
        return outs[:, :M] if M_pad != M else outs
    if not isinstance(outs, (list, tuple)):
        outs = [outs]
    return [o[:M] if M_pad != M else o for o in outs]


# ----------------------------------------------------------------------------
# LSTM recurrence kernels.
# ----------------------------------------------------------------------------
def _pick_unroll(tc, N, H, n_dirs=1):
    # Full unroll only when the live state is tiny (avoid vreg spills at
    # realistic N, H -- review item); otherwise a light unroll.
    if tc <= 8 and n_dirs * N * H <= 4096:
        return True
    return 2 if tc % 2 == 0 else 1


def _lstm_cell(g, h, c, whh_ref):
    """g: (N, 4H) precomputed x@W_ih^T + b_ih + b_hh (may be bf16);
    h, c: (N, H) f32; whh_ref: (H, 4H)."""
    H = h.shape[-1]
    # bf16 g + f32 dot result promotes to f32; accumulation stays f32.
    gates = g + jnp.dot(h.astype(whh_ref.dtype), whh_ref[...],
                        preferred_element_type=jnp.float32)
    # PyTorch gate order: i, f, g, o.
    i = jax.nn.sigmoid(gates[:, 0 * H:1 * H])
    f = jax.nn.sigmoid(gates[:, 1 * H:2 * H])
    gg = jnp.tanh(gates[:, 2 * H:3 * H])
    o = jax.nn.sigmoid(gates[:, 3 * H:4 * H])
    c_new = f * c + i * gg
    h_new = o * jnp.tanh(c_new)
    return h_new, c_new


def _make_birnn_fused_kernel(tc, unroll):
    """Both directions interleaved in one kernel (best on 1-TC v5e/v6e)."""
    def kernel(gf_ref, gb_ref, whf_ref, whb_ref, hf_ref, hb_ref,
               hfs, cfs, hbs, cbs):
        @pl.when(pl.program_id(0) == 0)
        def _():
            hfs[...] = jnp.zeros_like(hfs)
            cfs[...] = jnp.zeros_like(cfs)
            hbs[...] = jnp.zeros_like(hbs)
            cbs[...] = jnp.zeros_like(cbs)

        def body(s, carry):
            h_f, c_f, h_b, c_b = carry
            h_f, c_f = _lstm_cell(gf_ref[s], h_f, c_f, whf_ref)
            hf_ref[s] = h_f.astype(hf_ref.dtype)
            sb = tc - 1 - s
            h_b, c_b = _lstm_cell(gb_ref[sb], h_b, c_b, whb_ref)
            hb_ref[sb] = h_b.astype(hb_ref.dtype)
            return h_f, c_f, h_b, c_b

        carry0 = (hfs[...], cfs[...], hbs[...], cbs[...])
        h_f, c_f, h_b, c_b = jax.lax.fori_loop(0, tc, body, carry0,
                                               unroll=unroll)
        hfs[...] = h_f
        cfs[...] = c_f
        hbs[...] = h_b
        cbs[...] = c_b
    return kernel


def _make_birnn_split_kernel(tc, unroll):
    """One direction per grid point on the leading 'parallel' axis (v7x:
    one TensorCore per direction)."""
    def kernel(g_ref, whh_ref, h_ref, hs, cs):
        d = pl.program_id(0)          # 0 = forward, 1 = backward

        @pl.when(pl.program_id(1) == 0)
        def _():
            hs[...] = jnp.zeros_like(hs)
            cs[...] = jnp.zeros_like(cs)

        def body(s, carry):
            h, c = carry
            t = (1 - d) * s + d * (tc - 1 - s)   # fwd: s ; bwd: tc-1-s
            h, c = _lstm_cell(g_ref[t], h, c, whh_ref)
            h_ref[t] = h.astype(h_ref.dtype)
            return h, c

        h, c = jax.lax.fori_loop(0, tc, body, (hs[...], cs[...]),
                                 unroll=unroll)
        hs[...] = h
        cs[...] = c
    return kernel


def _choose_time_chunk(T, cap=32):
    # Largest divisor of T that is <= cap.  cap=32 keeps the chunk blocks
    # comfortably inside v7x's 64 MiB VMEM; raise toward 64 on v5e/v6e.
    best = 1
    for tc in range(1, min(T, cap) + 1):
        if T % tc == 0:
            best = tc
    return best


def birnn_recurrence_fused(g_f, g_b, whh_f_t, whh_b_t, *,
                           matmul_dtype=jnp.bfloat16, time_chunk=None):
    """g_f, g_b: (T, N, 4H) precomputed gate inputs.  whh_*_t: (H, 4H).
    Returns (h_f, h_b): each (T, N, H) f32, natural time order."""
    T, N, G4 = g_f.shape
    H = whh_f_t.shape[0]
    tc = _choose_time_chunk(T) if time_chunk is None else time_chunk
    assert T % tc == 0
    C = T // tc
    unroll = _pick_unroll(tc, N, H, n_dirs=2)

    whf = jnp.asarray(whh_f_t, matmul_dtype)
    whb = jnp.asarray(whh_b_t, matmul_dtype)

    hf, hb = pl.pallas_call(
        _make_birnn_fused_kernel(tc, unroll),
        out_shape=(jax.ShapeDtypeStruct((T, N, H), jnp.float32),
                   jax.ShapeDtypeStruct((T, N, H), jnp.float32)),
        grid_spec=pltpu.PrefetchScalarGridSpec(
            num_scalar_prefetch=0,
            grid=(C,),
            in_specs=[
                pl.BlockSpec((tc, N, G4), lambda c: (c, 0, 0)),
                pl.BlockSpec((tc, N, G4), lambda c: (C - 1 - c, 0, 0)),
                pl.BlockSpec((H, G4), lambda c: (0, 0)),
                pl.BlockSpec((H, G4), lambda c: (0, 0)),
            ],
            out_specs=(
                pl.BlockSpec((tc, N, H), lambda c: (c, 0, 0)),
                pl.BlockSpec((tc, N, H), lambda c: (C - 1 - c, 0, 0)),
            ),
            scratch_shapes=[pltpu.VMEM((N, H), jnp.float32)] * 4,
        ),
        compiler_params=pltpu.CompilerParams(
            dimension_semantics=("arbitrary",)),   # sequential recurrence
    )(g_f, g_b, whf, whb)
    return hf, hb


def birnn_recurrence_split(g, whh_t, *, matmul_dtype=jnp.bfloat16,
                           time_chunk=None):
    """g: (2, T, N, 4H) direction-stacked gate inputs; whh_t: (2, H, 4H).
    Returns h: (2, T, N, H) f32, both directions in natural time order."""
    _, T, N, G4 = g.shape
    H = whh_t.shape[-2]
    tc = _choose_time_chunk(T) if time_chunk is None else time_chunk
    assert T % tc == 0
    C = T // tc
    unroll = _pick_unroll(tc, N, H, n_dirs=1)

    whh = jnp.asarray(whh_t, matmul_dtype)

    def chunk_map(d, c):
        # forward direction consumes chunk c, backward chunk C-1-c.
        return (d, (1 - d) * c + d * (C - 1 - c), 0, 0)

    h = pl.pallas_call(
        _make_birnn_split_kernel(tc, unroll),
        out_shape=jax.ShapeDtypeStruct((2, T, N, H), jnp.float32),
        grid_spec=pltpu.PrefetchScalarGridSpec(
            num_scalar_prefetch=0,
            grid=(2, C),
            in_specs=[
                pl.BlockSpec((None, tc, N, G4), chunk_map),
                pl.BlockSpec((None, H, G4), lambda d, c: (d, 0, 0)),
            ],
            out_specs=pl.BlockSpec((None, tc, N, H), chunk_map),
            scratch_shapes=[pltpu.VMEM((N, H), jnp.float32)] * 2,
        ),
        compiler_params=pltpu.CompilerParams(
            # Only the direction axis is parallel (one TC per direction on
            # v7x); the time axis carries (h, c) scratch and must stay serial.
            dimension_semantics=("parallel", "arbitrary")),
    )(g, whh)
    return h


# ----------------------------------------------------------------------------
# BiRNN forward (matches the PyTorch module semantics).
# ----------------------------------------------------------------------------
def birnn_forward(x, params, *, hidden_size, num_layers,
                  matmul_dtype=jnp.bfloat16, time_chunk=None,
                  split_directions=False):
    """x: (N, T, input_size) -> (N, T, hidden_size).

    split_directions=True puts the fwd/bwd recurrences on a leading 'parallel'
    grid axis (use on v7x, 2 TCs); False keeps the fused interleave that is
    better on single-TC v5e/v6e."""
    N, T, D_in = x.shape
    H = hidden_size
    M = T * N
    x_tnd = jnp.transpose(x, (1, 0, 2)).astype(jnp.float32)     # (T, N, D)

    xs_cur = [x_tnd.reshape(M, D_in)]
    for layer in range(num_layers):
        wih_f = params[f"weight_ih_l{layer}"]
        wih_b = params[f"weight_ih_l{layer}_reverse"]
        whh_f = params[f"weight_hh_l{layer}"]
        whh_b = params[f"weight_hh_l{layer}_reverse"]
        b_f = params[f"bias_ih_l{layer}"] + params[f"bias_hh_l{layer}"]
        b_b = (params[f"bias_ih_l{layer}_reverse"]
               + params[f"bias_hh_l{layer}_reverse"])

        if layer == 0:
            ws = [[wih_f.T, wih_b.T]]                            # (D, 4H)
        else:
            # Input is [h_f | h_b]; avoid the concat by splitting W_ih
            # row-wise across the two halves.
            ws = [[wih_f[:, :H].T, wih_b[:, :H].T],
                  [wih_f[:, H:].T, wih_b[:, H:].T]]              # (H, 4H)

        if split_directions:
            g = fused_matmul(xs_cur, ws, [b_f, b_b], [4 * H, 4 * H],
                             matmul_dtype=matmul_dtype,
                             out_dtype=matmul_dtype,
                             stack_outputs=True)                 # (2, M, 4H)
            g = g.reshape(2, T, N, 4 * H)
            whh_t = jnp.stack([whh_f.T, whh_b.T])                # (2, H, 4H)
            h = birnn_recurrence_split(g, whh_t,
                                       matmul_dtype=matmul_dtype,
                                       time_chunk=time_chunk)    # (2,T,N,H)
            h2 = h.reshape(2, M, H)
            xs_cur = [(h2, 0), (h2, 1)]
        else:
            g_f, g_b = fused_matmul(xs_cur, ws, [b_f, b_b], [4 * H, 4 * H],
                                    matmul_dtype=matmul_dtype,
                                    out_dtype=matmul_dtype)
            h_f, h_b = birnn_recurrence_fused(
                g_f.reshape(T, N, 4 * H), g_b.reshape(T, N, 4 * H),
                whh_f.T, whh_b.T, matmul_dtype=matmul_dtype,
                time_chunk=time_chunk)
            xs_cur = [h_f.reshape(M, H), h_b.reshape(M, H)]

    # Final FC on time-major rows; fc_weight split across the direction
    # halves so [h_f | h_b] is never concatenated in HBM.
    w_fc = params["fc_weight"]                                   # (H, 2H)
    b_fc = params["fc_bias"]                                     # (H,)
    (y,) = fused_matmul(xs_cur, [[w_fc[:, :H].T], [w_fc[:, H:].T]],
                        [b_fc], [H], matmul_dtype=matmul_dtype,
                        out_dtype=jnp.float32)
    # The final (T,N,H)->(N,T,H) transpose stays in XLA; it is the smallest
    # tensor in the pipeline (folding it into the FC kernel needs a squeezed
    # second-minor block spec -- left as a follow-up).
    return jnp.transpose(y.reshape(T, N, H), (1, 0, 2))          # (N, T, H)


# ----------------------------------------------------------------------------
# Pure-JAX reference (lax.scan) for the correctness check.
# ----------------------------------------------------------------------------
def _lstm_dir_ref(x_tnd, w_ih, w_hh, b_ih, b_hh, reverse):
    T, N, _ = x_tnd.shape
    H = w_hh.shape[1]
    xs = x_tnd[::-1] if reverse else x_tnd

    def step(carry, x_t):
        h, c = carry
        gates = x_t @ w_ih.T + h @ w_hh.T + b_ih + b_hh
        i = jax.nn.sigmoid(gates[:, :H])
        f = jax.nn.sigmoid(gates[:, H:2 * H])
        g = jnp.tanh(gates[:, 2 * H:3 * H])
        o = jax.nn.sigmoid(gates[:, 3 * H:])
        c = f * c + i * g
        h = o * jnp.tanh(c)
        return (h, c), h

    init = (jnp.zeros((N, H), jnp.float32), jnp.zeros((N, H), jnp.float32))
    _, hs = jax.lax.scan(step, init, xs)
    return hs[::-1] if reverse else hs


def birnn_forward_ref(x, params, *, hidden_size, num_layers):
    N, T, _ = x.shape
    H = hidden_size
    inp = jnp.transpose(x, (1, 0, 2)).astype(jnp.float32)
    for layer in range(num_layers):
        outs = []
        for rev, sfx in ((False, ""), (True, "_reverse")):
            outs.append(
                _lstm_dir_ref(
                    inp,
                    params[f"weight_ih_l{layer}{sfx}"],
                    params[f"weight_hh_l{layer}{sfx}"],
                    params[f"bias_ih_l{layer}{sfx}"],
                    params[f"bias_hh_l{layer}{sfx}"],
                    rev,
                )
            )
        inp = jnp.concatenate(outs, axis=-1)
    flat = jnp.transpose(inp, (1, 0, 2)).reshape(N * T, 2 * H)
    out = flat @ params["fc_weight"].T + params["fc_bias"]
    return out.reshape(N, T, H)


# ----------------------------------------------------------------------------
# Deterministic parameter init (PyTorch-style uniform(-1/sqrt(H), 1/sqrt(H))).
# ----------------------------------------------------------------------------
def init_params(key, input_size, hidden_size, num_layers):
    H = hidden_size
    k = 1.0 / jnp.sqrt(jnp.float32(H))
    params = {}
    for layer in range(num_layers):
        in_sz = input_size if layer == 0 else 2 * H
        for sfx in ("", "_reverse"):
            for name, shape in (
                (f"weight_ih_l{layer}{sfx}", (4 * H, in_sz)),
                (f"weight_hh_l{layer}{sfx}", (4 * H, H)),
                (f"bias_ih_l{layer}{sfx}", (4 * H,)),
                (f"bias_hh_l{layer}{sfx}", (4 * H,)),
            ):
                key, sub = jax.random.split(key)
                params[name] = jax.random.uniform(
                    sub, shape, jnp.float32, minval=-k, maxval=k)
    key, sub = jax.random.split(key)
    params["fc_weight"] = jax.random.uniform(
        sub, (H, 2 * H), jnp.float32, minval=-k, maxval=k)
    key, sub = jax.random.split(key)
    params["fc_bias"] = jax.random.uniform(
        sub, (H,), jnp.float32, minval=-k, maxval=k)
    return params


if __name__ == "__main__":
    N, T, INPUT_SIZE = 2, 8, 16
    HIDDEN, LAYERS = 32, 2

    root = jax.random.PRNGKey(0)
    kx, kp = jax.random.split(root)
    x = jax.random.normal(kx, (N, T, INPUT_SIZE), jnp.float32)
    params = init_params(kp, INPUT_SIZE, HIDDEN, LAYERS)

    ref = birnn_forward_ref(x, params, hidden_size=HIDDEN, num_layers=LAYERS)

    # 1) exact-math path (f32 MXU operands, fused-direction recurrence):
    #    tight tolerance proves the kernel semantics match the module.
    out_f32 = jax.block_until_ready(jax.jit(functools.partial(
        birnn_forward, hidden_size=HIDDEN, num_layers=LAYERS,
        matmul_dtype=jnp.float32))(x, params))
    assert out_f32.shape == (N, T, HIDDEN), out_f32.shape
    assert jnp.allclose(out_f32, ref, atol=1e-5, rtol=1e-5), \
        float(jnp.max(jnp.abs(out_f32 - ref)))

    # 2) default performance path (bf16 MXU operands, bf16 gate storage);
    #    looser tolerance because operands are rounded to bf16.
    out_bf16 = jax.block_until_ready(jax.jit(functools.partial(
        birnn_forward, hidden_size=HIDDEN, num_layers=LAYERS))(x, params))
    assert out_bf16.shape == (N, T, HIDDEN), out_bf16.shape
    assert jnp.allclose(out_bf16, ref, atol=7e-2, rtol=7e-2), \
        float(jnp.max(jnp.abs(out_bf16 - ref)))

    # 3) v7x-style path: directions on a 'parallel' grid axis (one TC each).
    out_split = jax.block_until_ready(jax.jit(functools.partial(
        birnn_forward, hidden_size=HIDDEN, num_layers=LAYERS,
        split_directions=True))(x, params))
    assert out_split.shape == (N, T, HIDDEN), out_split.shape
    assert jnp.allclose(out_split, ref, atol=7e-2, rtol=7e-2), \
        float(jnp.max(jnp.abs(out_split - ref)))

    print("KERNEL_OK")
</pallas_src>

<mosaic_0001>
module attributes {stable_mosaic.version = 11 : i64} {
  func.func @kernel(%arg0: i32, %arg1: i32, %arg2: memref<16x16xf32, #tpu.memory_space<vmem>>, %arg3: memref<16x128xf32, #tpu.memory_space<vmem>>, %arg4: memref<16x128xf32, #tpu.memory_space<vmem>>, %arg5: memref<1x128xf32, #tpu.memory_space<vmem>>, %arg6: memref<1x128xf32, #tpu.memory_space<vmem>>, %arg7: memref<16x128xf32, #tpu.memory_space<vmem>>, %arg8: memref<16x128xf32, #tpu.memory_space<vmem>>) attributes {dimension_semantics = [#tpu.dimension_semantics<parallel>, #tpu.dimension_semantics<parallel>], iteration_bounds = array<i64: 1, 1>, scalar_prefetch = 0 : i64, scratch_operands = 0 : i64, tpu.core_type = #tpu.core_type<tc>, window_params = [{transform_indices = @transform_0, window_bounds = array<i64: 16, 16>}, {transform_indices = @transform_1, window_bounds = array<i64: 16, 128>}, {transform_indices = @transform_2, window_bounds = array<i64: 16, 128>}, {transform_indices = @transform_3, window_bounds = array<i64: 1, 128>}, {transform_indices = @transform_4, window_bounds = array<i64: 1, 128>}, {transform_indices = @transform_5, window_bounds = array<i64: 16, 128>}, {transform_indices = @transform_6, window_bounds = array<i64: 16, 128>}]} {
    %c0 = arith.constant 0 : index
    %c0_0 = arith.constant 0 : index
    %0 = vector.load %arg2[%c0, %c0_0] : memref<16x16xf32, #tpu.memory_space<vmem>>, vector<16x16xf32>
    %c0_1 = arith.constant 0 : index
    %c0_2 = arith.constant 0 : index
    %1 = vector.load %arg5[%c0_1, %c0_2] : memref<1x128xf32, #tpu.memory_space<vmem>>, vector<1x128xf32>
    %c0_3 = arith.constant 0 : index
    %c0_4 = arith.constant 0 : index
    %2 = vector.load %arg3[%c0_3, %c0_4] : memref<16x128xf32, #tpu.memory_space<vmem>>, vector<16x128xf32>
    %cst = arith.constant dense<0.000000e+00> : vector<16x128xf32>
    %3 = tpu.matmul %0, %2, %cst {dimension_numbers = #tpu.dot_dimension_numbers<[1], [0], [0], [1], [0, 0, 1, 1], [], []>} : vector<16x16xf32>, vector<16x128xf32>, vector<16x128xf32> -> vector<16x128xf32>
    %4 = vector.broadcast %1 : vector<1x128xf32> to vector<16x128xf32>
    %5 = arith.addf %4, %3 : vector<16x128xf32>
    %c0_5 = arith.constant 0 : index
    %c0_6 = arith.constant 0 : index
    %6 = vector.load %arg7[%c0_5, %c0_6] : memref<16x128xf32, #tpu.memory_space<vmem>>, vector<16x128xf32>
    tpu.vector_store %arg7[%c0_5, %c0_6], %5 {strides = array<i32>} : memref<16x128xf32, #tpu.memory_space<vmem>>, vector<16x128xf32>,
    %c0_7 = arith.constant 0 : index
    %c0_8 = arith.constant 0 : index
    %7 = vector.load %arg6[%c0_7, %c0_8] : memref<1x128xf32, #tpu.memory_space<vmem>>, vector<1x128xf32>
    %c0_9 = arith.constant 0 : index
    %c0_10 = arith.constant 0 : index
    %8 = vector.load %arg4[%c0_9, %c0_10] : memref<16x128xf32, #tpu.memory_space<vmem>>, vector<16x128xf32>
    %cst_11 = arith.constant dense<0.000000e+00> : vector<16x128xf32>
    %9 = tpu.matmul %0, %8, %cst_11 {dimension_numbers = #tpu.dot_dimension_numbers<[1], [0], [0], [1], [0, 0, 1, 1], [], []>} : vector<16x16xf32>, vector<16x128xf32>, vector<16x128xf32> -> vector<16x128xf32>
    %10 = vector.broadcast %7 : vector<1x128xf32> to vector<16x128xf32>
    %11 = arith.addf %10, %9 : vector<16x128xf32>
    %c0_12 = arith.constant 0 : index
    %c0_13 = arith.constant 0 : index
    %12 = vector.load %arg8[%c0_12, %c0_13] : memref<16x128xf32, #tpu.memory_space<vmem>>, vector<16x128xf32>
    tpu.vector_store %arg8[%c0_12, %c0_13], %11 {strides = array<i32>} : memref<16x128xf32, #tpu.memory_space<vmem>>, vector<16x128xf32>,
    return
  }
  func.func @transform_0(%arg0: i32, %arg1: i32) -> (i32, i32) {
    %c0_i32 = arith.constant 0 : i32
    %c0_i32_0 = arith.constant 0 : i32
    return %arg1, %c0_i32 : i32, i32
  }
  func.func @transform_1(%arg0: i32, %arg1: i32) -> (i32, i32) {
    %c0_i32 = arith.constant 0 : i32
    %c0_i32_0 = arith.constant 0 : i32
    return %c0_i32, %arg0 : i32, i32
  }
  func.func @transform_2(%arg0: i32, %arg1: i32) -> (i32, i32) {
    %c0_i32 = arith.constant 0 : i32
    %c0_i32_0 = arith.constant 0 : i32
    return %c0_i32, %arg0 : i32, i32
  }
  func.func @transform_3(%arg0: i32, %arg1: i32) -> (i32, i32) {
    %c0_i32 = arith.constant 0 : i32
    %c0_i32_0 = arith.constant 0 : i32
    return %c0_i32, %arg0 : i32, i32
  }
  func.func @transform_4(%arg0: i32, %arg1: i32) -> (i32, i32) {
    %c0_i32 = arith.constant 0 : i32
    %c0_i32_0 = arith.constant 0 : i32
    return %c0_i32, %arg0 : i32, i32
  }
  func.func @transform_5(%arg0: i32, %arg1: i32) -> (i32, i32) {
    %c0_i32 = arith.constant 0 : i32
    return %arg1, %arg0 : i32, i32
  }
  func.func @transform_6(%arg0: i32, %arg1: i32) -> (i32, i32) {
    %c0_i32 = arith.constant 0 : i32
    return %arg1, %arg0 : i32, i32
  }
}

module attributes {stable_mosaic.version = 11 : i64} {
  func.func @kernel(%arg0: i32, %arg1: memref<8x2x128xf32, #tpu.memory_space<vmem>>, %arg2: memref<8x2x128xf32, #tpu.memory_space<vmem>>, %arg3: memref<32x128xf32, #tpu.memory_space<vmem>>, %arg4: memref<32x128xf32, #tpu.memory_space<vmem>>, %arg5: memref<8x2x32xf32, #tpu.memory_space<vmem>>, %arg6: memref<8x2x32xf32, #tpu.memory_space<vmem>>, %arg7: memref<2x32xf32, #tpu.memory_space<vmem>>, %arg8: memref<2x32xf32, #tpu.memory_space<vmem>>, %arg9: memref<2x32xf32, #tpu.memory_space<vmem>>, %arg10: memref<2x32xf32, #tpu.memory_space<vmem>>) attributes {dimension_semantics = [#tpu.dimension_semantics<arbitrary>], iteration_bounds = array<i64: 1>, scalar_prefetch = 0 : i64, scratch_operands = 4 : i64, tpu.core_type = #tpu.core_type<tc>, window_params = [{transform_indices = @transform_0, window_bounds = array<i64: 8, 2, 128>}, {transform_indices = @transform_1, window_bounds = array<i64: 8, 2, 128>}, {pipeline_mode = #tpu.pipeline_mode<synchronous>, transform_indices = @transform_2, window_bounds = array<i64: 32, 128>}, {pipeline_mode = #tpu.pipeline_mode<synchronous>, transform_indices = @transform_3, window_bounds = array<i64: 32, 128>}, {transform_indices = @transform_4, window_bounds = array<i64: 8, 2, 32>}, {transform_indices = @transform_5, window_bounds = array<i64: 8, 2, 32>}]} {
    %c0_i32 = arith.constant 0 : i32
    %0 = arith.cmpi eq, %arg0, %c0_i32 : i32
    %1 = arith.extui %0 : i1 to i32
    %c0_i32_0 = arith.constant 0 : i32
    %2 = arith.cmpi ne, %1, %c0_i32_0 : i32
    scf.if %2 {
      %cst_184 = arith.constant 0.000000e+00 : f32
      %579 = vector.broadcast %cst_184 : f32 to vector<2x32xf32>
      %c0_185 = arith.constant 0 : index
      %c0_186 = arith.constant 0 : index
      %580 = vector.load %arg7[%c0_185, %c0_186] : memref<2x32xf32, #tpu.memory_space<vmem>>, vector<2x32xf32>
      tpu.vector_store %arg7[%c0_185, %c0_186], %579 {strides = array<i32>} : memref<2x32xf32, #tpu.memory_space<vmem>>, vector<2x32xf32>,
      %cst_187 = arith.constant 0.000000e+00 : f32
      %581 = vector.broadcast %cst_187 : f32 to vector<2x32xf32>
      %c0_188 = arith.constant 0 : index
      %c0_189 = arith.constant 0 : index
      %582 = vector.load %arg8[%c0_188, %c0_189] : memref<2x32xf32, #tpu.memory_space<vmem>>, vector<2x32xf32>
      tpu.vector_store %arg8[%c0_188, %c0_189], %581 {strides = array<i32>} : memref<2x32xf32, #tpu.memory_space<vmem>>, vector<2x32xf32>,
      %cst_190 = arith.constant 0.000000e+00 : f32
      %583 = vector.broadcast %cst_190 : f32 to vector<2x32xf32>
      %c0_191 = arith.constant 0 : index
      %c0_192 = arith.constant 0 : index
      %584 = vector.load %arg9[%c0_191, %c0_192] : memref<2x32xf32, #tpu.memory_space<vmem>>, vector<2x32xf32>
      tpu.vector_store %arg9[%c0_191, %c0_192], %583 {strides = array<i32>} : memref<2x32xf32, #tpu.memory_space<vmem>>, vector<2x32xf32>,
      %cst_193 = arith.constant 0.000000e+00 : f32
      %585 = vector.broadcast %cst_193 : f32 to vector<2x32xf32>
      %c0_194 = arith.constant 0 : index
      %c0_195 = arith.constant 0 : index
      %586 = vector.load %arg10[%c0_194, %c0_195] : memref<2x32xf32, #tpu.memory_space<vmem>>, vector<2x32xf32>
      tpu.vector_store %arg10[%c0_194, %c0_195], %585 {strides = array<i32>} : memref<2x32xf32, #tpu.memory_space<vmem>>, vector<2x32xf32>,
    } else {
    }
    %c0 = arith.constant 0 : index
    %c0_1 = arith.constant 0 : index
    %3 = vector.load %arg7[%c0, %c0_1] : memref<2x32xf32, #tpu.memory_space<vmem>>, vector<2x32xf32>
    %c0_2 = arith.constant 0 : index
    %c0_3 = arith.constant 0 : index
    %4 = vector.load %arg8[%c0_2, %c0_3] : memref<2x32xf32, #tpu.memory_space<vmem>>, vector<2x32xf32>
    %c0_4 = arith.constant 0 : index
    %c0_5 = arith.constant 0 : index
    %5 = vector.load %arg9[%c0_4, %c0_5] : memref<2x32xf32, #tpu.memory_space<vmem>>, vector<2x32xf32>
    %c0_6 = arith.constant 0 : index
    %c0_7 = arith.constant 0 : index
    %6 = vector.load %arg10[%c0_6, %c0_7] : memref<2x32xf32, #tpu.memory_space<vmem>>, vector<2x32xf32>
    %c0_i32_8 = arith.constant 0 : i32
    %7 = arith.index_cast %c0_i32_8 : i32 to index
    %c0_9 = arith.constant 0 : index
    %c0_10 = arith.constant 0 : index
    %8 = vector.load %arg1[%7, %c0_9, %c0_10] : memref<8x2x128xf32, #tpu.memory_space<vmem>>, vector<1x2x128xf32>
    %9 = vector.shape_cast %8 : vector<1x2x128xf32> to vector<2x128xf32>
    %c0_11 = arith.constant 0 : index
    %c0_12 = arith.constant 0 : index
    %10 = vector.load %arg3[%c0_11, %c0_12] : memref<32x128xf32, #tpu.memory_space<vmem>>, vector<32x128xf32>
    %cst = arith.constant dense<0.000000e+00> : vector<2x128xf32>
    %11 = tpu.matmul %3, %10, %cst {dimension_numbers = #tpu.dot_dimension_numbers<[1], [0], [0], [1], [0, 0, 1, 1], [], []>} : vector<2x32xf32>, vector<32x128xf32>, vector<2x128xf32> -> vector<2x128xf32>
    %12 = arith.addf %9, %11 : vector<2x128xf32>
    %13 = vector.extract_strided_slice %12 {offsets = [0, 0], sizes = [2, 32], strides = [1, 1]} : vector<2x128xf32> to vector<2x32xf32>
    %14 = arith.negf %13 : vector<2x32xf32>
    %15 = math.exp %14 : vector<2x32xf32>
    %cst_13 = arith.constant 1.000000e+00 : f32
    %16 = vector.broadcast %cst_13 : f32 to vector<2x32xf32>
    %17 = arith.addf %16, %15 : vector<2x32xf32>
    %18 = arith.divf %16, %17 : vector<2x32xf32>
    %19 = vector.extract_strided_slice %12 {offsets = [0, 32], sizes = [2, 32], strides = [1, 1]} : vector<2x128xf32> to vector<2x32xf32>
    %20 = arith.negf %19 : vector<2x32xf32>
    %21 = math.exp %20 : vector<2x32xf32>
    %cst_14 = arith.constant 1.000000e+00 : f32
    %22 = vector.broadcast %cst_14 : f32 to vector<2x32xf32>
    %23 = arith.addf %22, %21 : vector<2x32xf32>
    %24 = arith.divf %22, %23 : vector<2x32xf32>
    %25 = vector.extract_strided_slice %12 {offsets = [0, 64], sizes = [2, 32], strides = [1, 1]} : vector<2x128xf32> to vector<2x32xf32>
    %26 = math.tanh %25 : vector<2x32xf32>
    %27 = vector.extract_strided_slice %12 {offsets = [0, 96], sizes = [2, 32], strides = [1, 1]} : vector<2x128xf32> to vector<2x32xf32>
    %28 = arith.negf %27 : vector<2x32xf32>
    %29 = math.exp %28 : vector<2x32xf32>
    %cst_15 = arith.constant 1.000000e+00 : f32
    %30 = vector.broadcast %cst_15 : f32 to vector<2x32xf32>
    %31 = arith.addf %30, %29 : vector<2x32xf32>
    %32 = arith.divf %30, %31 : vector<2x32xf32>
    %33 = arith.mulf %24, %4 : vector<2x32xf32>
    %34 = arith.mulf %18, %26 : vector<2x32xf32>
    %35 = arith.addf %33, %34 : vector<2x32xf32>
    %36 = math.tanh %35 : vector<2x32xf32>
    %37 = arith.mulf %32, %36 : vector<2x32xf32>
    %38 = arith.index_cast %c0_i32_8 : i32 to index
    %c0_16 = arith.constant 0 : index
    %c0_17 = arith.constant 0 : index
    %39 = vector.load %arg5[%38, %c0_16, %c0_17] : memref<8x2x32xf32, #tpu.memory_space<vmem>>, vector<1x2x32xf32>
    %40 = vector.shape_cast %39 : vector<1x2x32xf32> to vector<2x32xf32>
    %41 = vector.shape_cast %37 : vector<2x32xf32> to vector<1x2x32xf32>
    tpu.vector_store %arg5[%38, %c0_16, %c0_17], %41 {strides = array<i32>} : memref<8x2x32xf32, #tpu.memory_space<vmem>>, vector<1x2x32xf32>,
    %c7_i32 = arith.constant 7 : i32
    %42 = arith.subi %c7_i32, %c0_i32_8 : i32
    %43 = arith.index_cast %42 : i32 to index
    %c0_18 = arith.constant 0 : index
    %c0_19 = arith.constant 0 : index
    %44 = vector.load %arg2[%43, %c0_18, %c0_19] : memref<8x2x128xf32, #tpu.memory_space<vmem>>, vector<1x2x128xf32>
    %45 = vector.shape_cast %44 : vector<1x2x128xf32> to vector<2x128xf32>
    %c0_20 = arith.constant 0 : index
    %c0_21 = arith.constant 0 : index
    %46 = vector.load %arg4[%c0_20, %c0_21] : memref<32x128xf32, #tpu.memory_space<vmem>>, vector<32x128xf32>
    %cst_22 = arith.constant dense<0.000000e+00> : vector<2x128xf32>
    %47 = tpu.matmul %5, %46, %cst_22 {dimension_numbers = #tpu.dot_dimension_numbers<[1], [0], [0], [1], [0, 0, 1, 1], [], []>} : vector<2x32xf32>, vector<32x128xf32>, vector<2x128xf32> -> vector<2x128xf32>
    %48 = arith.addf %45, %47 : vector<2x128xf32>
    %49 = vector.extract_strided_slice %48 {offsets = [0, 0], sizes = [2, 32], strides = [1, 1]} : vector<2x128xf32> to vector<2x32xf32>
    %50 = arith.negf %49 : vector<2x32xf32>
    %51 = math.exp %50 : vector<2x32xf32>
    %cst_23 = arith.constant 1.000000e+00 : f32
    %52 = vector.broadcast %cst_23 : f32 to vector<2x32xf32>
    %53 = arith.addf %52, %51 : vector<2x32xf32>
    %54 = arith.divf %52, %53 : vector<2x32xf32>
    %55 = vector.extract_strided_slice %48 {offsets = [0, 32], sizes = [2, 32], strides = [1, 1]} : vector<2x128xf32> to vector<2x32xf32>
    %56 = arith.negf %55 : vector<2x32xf32>
    %57 = math.exp %56 : vector<2x32xf32>
    %cst_24 = arith.constant 1.000000e+00 : f32
    %58 = vector.broadcast %cst_24 : f32 to vector<2x32xf32>
    %59 = arith.addf %58, %57 : vector<2x32xf32>
    %60 = arith.divf %58, %59 : vector<2x32xf32>
    %61 = vector.extract_strided_slice %48 {offsets = [0, 64], sizes = [2, 32], strides = [1, 1]} : vector<2x128xf32> to vector<2x32xf32>
    %62 = math.tanh %61 : vector<2x32xf32>
    %63 = vector.extract_strided_slice %48 {offsets = [0, 96], sizes = [2, 32], strides = [1, 1]} : vector<2x128xf32> to vector<2x32xf32>
    %64 = arith.negf %63 : vector<2x32xf32>
    %65 = math.exp %64 : vector<2x32xf32>
    %cst_25 = arith.constant 1.000000e+00 : f32
    %66 = vector.broadcast %cst_25 : f32 to vector<2x32xf32>
    %67 = arith.addf %66, %65 : vector<2x32xf32>
    %68 = arith.divf %66, %67 : vector<2x32xf32>
    %69 = arith.mulf %60, %6 : vector<2x32xf32>
    %70 = arith.mulf %54, %62 : vector<2x32xf32>
    %71 = arith.addf %69, %70 : vector<2x32xf32>
    %72 = math.tanh %71 : vector<2x32xf32>
    %73 = arith.mulf %68, %72 : vector<2x32xf32>
    %74 = arith.index_cast %42 : i32 to index
    %c0_26 = arith.constant 0 : index
    %c0_27 = arith.constant 0 : index
    %75 = vector.load %arg6[%74, %c0_26, %c0_27] : memref<8x2x32xf32, #tpu.memory_space<vmem>>, vector<1x2x32xf32>
    %76 = vector.shape_cast %75 : vector<1x2x32xf32> to vector<2x32xf32>
    %77 = vector.shape_cast %73 : vector<2x32xf32> to vector<1x2x32xf32>
    tpu.vector_store %arg6[%74, %c0_26, %c0_27], %77 {strides = array<i32>} : memref<8x2x32xf32, #tpu.memory_space<vmem>>, vector<1x2x32xf32>,
    %c1_i32 = arith.constant 1 : i32
    %78 = arith.index_cast %c1_i32 : i32 to index
    %c0_28 = arith.constant 0 : index
    %c0_29 = arith.constant 0 : index
    %79 = vector.load %arg1[%78, %c0_28, %c0_29] : memref<8x2x128xf32, #tpu.memory_space<vmem>>, vector<1x2x128xf32>
    %80 = vector.shape_cast %79 : vector<1x2x128xf32> to vector<2x128xf32>
    %c0_30 = arith.constant 0 : index
    %c0_31 = arith.constant 0 : index
    %81 = vector.load %arg3[%c0_30, %c0_31] : memref<32x128xf32, #tpu.memory_space<vmem>>, vector<32x128xf32>
    %cst_32 = arith.constant dense<0.000000e+00> : vector<2x128xf32>
    %82 = tpu.matmul %37, %81, %cst_32 {dimension_numbers = #tpu.dot_dimension_numbers<[1], [0], [0], [1], [0, 0, 1, 1], [], []>} : vector<2x32xf32>, vector<32x128xf32>, vector<2x128xf32> -> vector<2x128xf32>
    %83 = arith.addf %80, %82 : vector<2x128xf32>
    %84 = vector.extract_strided_slice %83 {offsets = [0, 0], sizes = [2, 32], strides = [1, 1]} : vector<2x128xf32> to vector<2x32xf32>
    %85 = arith.negf %84 : vector<2x32xf32>
    %86 = math.exp %85 : vector<2x32xf32>
    %cst_33 = arith.constant 1.000000e+00 : f32
    %87 = vector.broadcast %cst_33 : f32 to vector<2x32xf32>
    %88 = arith.addf %87, %86 : vector<2x32xf32>
    %89 = arith.divf %87, %88 : vector<2x32xf32>
    %90 = vector.extract_strided_slice %83 {offsets = [0, 32], sizes = [2, 32], strides = [1, 1]} : vector<2x128xf32> to vector<2x32xf32>
    %91 = arith.negf %90 : vector<2x32xf32>
    %92 = math.exp %91 : vector<2x32xf32>
    %cst_34 = arith.constant 1.000000e+00 : f32
    %93 = vector.broadcast %cst_34 : f32 to vector<2x32xf32>
    %94 = arith.addf %93, %92 : vector<2x32xf32>
    %95 = arith.divf %93, %94 : vector<2x32xf32>
    %96 = vector.extract_strided_slice %83 {offsets = [0, 64], sizes = [2, 32], strides = [1, 1]} : vector<2x128xf32> to vector<2x32xf32>
    %97 = math.tanh %96 : vector<2x32xf32>
    %98 = vector.extract_strided_slice %83 {offsets = [0, 96], sizes = [2, 32], strides = [1, 1]} : vector<2x128xf32> to vector<2x32xf32>
    %99 = arith.negf %98 : vector<2x32xf32>
    %100 = math.exp %99 : vector<2x32xf32>
    %cst_35 = arith.constant 1.000000e+00 : f32
    %101 = vector.broadcast %cst_35 : f32 to vector<2x32xf32>
    %102 = arith.addf %101, %100 : vector<2x32xf32>
    %103 = arith.divf %101, %102 : vector<2x32xf32>
    %104 = arith.mulf %95, %35 : vector<2x32xf32>
    %105 = arith.mulf %89, %97 : vector<2x32xf32>
    %106 = arith.addf %104, %105 : vector<2x32xf32>
    %107 = math.tanh %106 : vector<2x32xf32>
    %108 = arith.mulf %103, %107 : vector<2x32xf32>
    %109 = arith.index_cast %c1_i32 : i32 to index
    %c0_36 = arith.constant 0 : index
    %c0_37 = arith.constant 0 : index
    %110 = vector.load %arg5[%109, %c0_36, %c0_37] : memref<8x2x32xf32, #tpu.memory_space<vmem>>, vector<1x2x32xf32>
    %111 = vector.shape_cast %110 : vector<1x2x32xf32> to vector<2x32xf32>
    %112 = vector.shape_cast %108 : vector<2x32xf32> to vector<1x2x32xf32>
    tpu.vector_store %arg5[%109, %c0_36, %c0_37], %112 {strides = array<i32>} : memref<8x2x32xf32, #tpu.memory_space<vmem>>, vector<1x2x32xf32>,
    %c7_i32_38 = arith.constant 7 : i32
    %113 = arith.subi %c7_i32_38, %c1_i32 : i32
    %114 = arith.index_cast %113 : i32 to index
    %c0_39 = arith.constant 0 : index
    %c0_40 = arith.constant 0 : index
    %115 = vector.load %arg2[%114, %c0_39, %c0_40] : memref<8x2x128xf32, #tpu.memory_space<vmem>>, vector<1x2x128xf32>
    %116 = vector.shape_cast %115 : vector<1x2x128xf32> to vector<2x128xf32>
    %c0_41 = arith.constant 0 : index
    %c0_42 = arith.constant 0 : index
    %117 = vector.load %arg4[%c0_41, %c0_42] : memref<32x128xf32, #tpu.memory_space<vmem>>, vector<32x128xf32>
    %cst_43 = arith.constant dense<0.000000e+00> : vector<2x128xf32>
    %118 = tpu.matmul %73, %117, %cst_43 {dimension_numbers = #tpu.dot_dimension_numbers<[1], [0], [0], [1], [0, 0, 1, 1], [], []>} : vector<2x32xf32>, vector<32x128xf32>, vector<2x128xf32> -> vector<2x128xf32>
    %119 = arith.addf %116, %118 : vector<2x128xf32>
    %120 = vector.extract_strided_slice %119 {offsets = [0, 0], sizes = [2, 32], strides = [1, 1]} : vector<2x128xf32> to vector<2x32xf32>
    %121 = arith.negf %120 : vector<2x32xf32>
    %122 = math.exp %121 : vector<2x32xf32>
    %cst_44 = arith.constant 1.000000e+00 : f32
    %123 = vector.broadcast %cst_44 : f32 to vector<2x32xf32>
    %124 = arith.addf %123, %122 : vector<2x32xf32>
    %125 = arith.divf %123, %124 : vector<2x32xf32>
    %126 = vector.extract_strided_slice %119 {offsets = [0, 32], sizes = [2, 32], strides = [1, 1]} : vector<2x128xf32> to vector<2x32xf32>
    %127 = arith.negf %126 : vector<2x32xf32>
    %128 = math.exp %127 : vector<2x32xf32>
    %cst_45 = arith.constant 1.000000e+00 : f32
    %129 = vector.broadcast %cst_45 : f32 to vector<2x32xf32>
    %130 = arith.addf %129, %128 : vector<2x32xf32>
    %131 = arith.divf %129, %130 : vector<2x32xf32>
    %132 = vector.extract_strided_slice %119 {offsets = [0, 64], sizes = [2, 32], strides = [1, 1]} : vector<2x128xf32> to vector<2x32xf32>
    %133 = math.tanh %132 : vector<2x32xf32>
    %134 = vector.extract_strided_slice %119 {offsets = [0, 96], sizes = [2, 32], strides = [1, 1]} : vector<2x128xf32> to vector<2x32xf32>
    %135 = arith.negf %134 : vector<2x32xf32>
    %136 = math.exp %135 : vector<2x32xf32>
    %cst_46 = arith.constant 1.000000e+00 : f32
    %137 = vector.broadcast %cst_46 : f32 to vector<2x32xf32>
    %138 = arith.addf %137, %136 : vector<2x32xf32>
    %139 = arith.divf %137, %138 : vector<2x32xf32>
    %140 = arith.mulf %131, %71 : vector<2x32xf32>
    %141 = arith.mulf %125, %133 : vector<2x32xf32>
    %142 = arith.addf %140, %141 : vector<2x32xf32>
    %143 = math.tanh %142 : vector<2x32xf32>
    %144 = arith.mulf %139, %143 : vector<2x32xf32>
    %145 = arith.index_cast %113 : i32 to index
    %c0_47 = arith.constant 0 : index
    %c0_48 = arith.constant 0 : index
    %146 = vector.load %arg6[%145, %c0_47, %c0_48] : memref<8x2x32xf32, #tpu.memory_space<vmem>>, vector<1x2x32xf32>
    %147 = vector.shape_cast %146 : vector<1x2x32xf32> to vector<2x32xf32>
    %148 = vector.shape_cast %144 : vector<2x32xf32> to vector<1x2x32xf32>
    tpu.vector_store %arg6[%145, %c0_47, %c0_48], %148 {strides = array<i32>} : memref<8x2x32xf32, #tpu.memory_space<vmem>>, vector<1x2x32xf32>,
    %c2_i32 = arith.constant 2 : i32
    %149 = arith.index_cast %c2_i32 : i32 to index
    %c0_49 = arith.constant 0 : index
    %c0_50 = arith.constant 0 : index
    %150 = vector.load %arg1[%149, %c0_49, %c0_50] : memref<8x2x128xf32, #tpu.memory_space<vmem>>, vector<1x2x128xf32>
    %151 = vector.shape_cast %150 : vector<1x2x128xf32> to vector<2x128xf32>
    %c0_51 = arith.constant 0 : index
    %c0_52 = arith.constant 0 : index
    %152 = vector.load %arg3[%c0_51, %c0_52] : memref<32x128xf32, #tpu.memory_space<vmem>>, vector<32x128xf32>
    %cst_53 = arith.constant dense<0.000000e+00> : vector<2x128xf32>
    %153 = tpu.matmul %108, %152, %cst_53 {dimension_numbers = #tpu.dot_dimension_numbers<[1], [0], [0], [1], [0, 0, 1, 1], [], []>} : vector<2x32xf32>, vector<32x128xf32>, vector<2x128xf32> -> vector<2x128xf32>
    %154 = arith.addf %151, %153 : vector<2x128xf32>
    %155 = vector.extract_strided_slice %154 {offsets = [0, 0], sizes = [2, 32], strides = [1, 1]} : vector<2x128xf32> to vector<2x32xf32>
    %156 = arith.negf %155 : vector<2x32xf32>
    %157 = math.exp %156 : vector<2x32xf32>
    %cst_54 = arith.constant 1.000000e+00 : f32
    %158 = vector.broadcast %cst_54 : f32 to vector<2x32xf32>
    %159 = arith.addf %158, %157 : vector<2x32xf32>
    %160 = arith.divf %158, %159 : vector<2x32xf32>
    %161 = vector.extract_strided_slice %154 {offsets = [0, 32], sizes = [2, 32], strides = [1, 1]} : vector<2x128xf32> to vector<2x32xf32>
    %162 = arith.negf %161 : vector<2x32xf32>
    %163 = math.exp %162 : vector<2x32xf32>
    %cst_55 = arith.constant 1.000000e+00 : f32
    %164 = vector.broadcast %cst_55 : f32 to vector<2x32xf32>
    %165 = arith.addf %164, %163 : vector<2x32xf32>
    %166 = arith.divf %164, %165 : vector<2x32xf32>
    %167 = vector.extract_strided_slice %154 {offsets = [0, 64], sizes = [2, 32], strides = [1, 1]} : vector<2x128xf32> to vector<2x32xf32>
    %168 = math.tanh %167 : vector<2x32xf32>
    %169 = vector.extract_strided_slice %154 {offsets = [0, 96], sizes = [2, 32], strides = [1, 1]} : vector<2x128xf32> to vector<2x32xf32>
    %170 = arith.negf %169 : vector<2x32xf32>
    %171 = math.exp %170 : vector<2x32xf32>
    %cst_56 = arith.constant 1.000000e+00 : f32
    %172 = vector.broadcast %cst_56 : f32 to vector<2x32xf32>
    %173 = arith.addf %172, %171 : vector<2x32xf32>
    %174 = arith.divf %172, %173 : vector<2x32xf32>
    %175 = arith.mulf %166, %106 : vector<2x32xf32>
    %176 = arith.mulf %160, %168 : vector<2x32xf32>
    %177 = arith.addf %175, %176 : vector<2x32xf32>
    %178 = math.tanh %177 : vector<2x32xf32>
    %179 = arith.mulf %174, %178 : vector<2x32xf32>
    %180 = arith.index_cast %c2_i32 : i32 to index
    %c0_57 = arith.constant 0 : index
    %c0_58 = arith.constant 0 : index
    %181 = vector.load %arg5[%180, %c0_57, %c0_58] : memref<8x2x32xf32, #tpu.memory_space<vmem>>, vector<1x2x32xf32>
    %182 = vector.shape_cast %181 : vector<1x2x32xf32> to vector<2x32xf32>
    %183 = vector.shape_cast %179 : vector<2x32xf32> to vector<1x2x32xf32>
    tpu.vector_store %arg5[%180, %c0_57, %c0_58], %183 {strides = array<i32>} : memref<8x2x32xf32, #tpu.memory_space<vmem>>, vector<1x2x32xf32>,
    %c7_i32_59 = arith.constant 7 : i32
    %184 = arith.subi %c7_i32_59, %c2_i32 : i32
    %185 = arith.index_cast %184 : i32 to index
    %c0_60 = arith.constant 0 : index
    %c0_61 = arith.constant 0 : index
    %186 = vector.load %arg2[%185, %c0_60, %c0_61] : memref<8x2x128xf32, #tpu.memory_space<vmem>>, vector<1x2x128xf32>
    %187 = vector.shape_cast %186 : vector<1x2x128xf32> to vector<2x128xf32>
    %c0_62 = arith.constant 0 : index
    %c0_63 = arith.constant 0 : index
    %188 = vector.load %arg4[%c0_62, %c0_63] : memref<32x128xf32, #tpu.memory_space<vmem>>, vector<32x128xf32>
    %cst_64 = arith.constant dense<0.000000e+00> : vector<2x128xf32>
    %189 = tpu.matmul %144, %188, %cst_64 {dimension_numbers = #tpu.dot_dimension_numbers<[1], [0], [0], [1], [0, 0, 1, 1], [], []>} : vector<2x32xf32>, vector<32x128xf32>, vector<2x128xf32> -> vector<2x128xf32>
    %190 = arith.addf %187, %189 : vector<2x128xf32>
    %191 = vector.extract_strided_slice %190 {offsets = [0, 0], sizes = [2, 32], strides = [1, 1]} : vector<2x128xf32> to vector<2x32xf32>
    %192 = arith.negf %191 : vector<2x32xf32>
    %193 = math.exp %192 : vector<2x32xf32>
    %cst_65 = arith.constant 1.000000e+00 : f32
    %194 = vector.broadcast %cst_65 : f32 to vector<2x32xf32>
    %195 = arith.addf %194, %193 : vector<2x32xf32>
    %196 = arith.divf %194, %195 : vector<2x32xf32>
    %197 = vector.extract_strided_slice %190 {offsets = [0, 32], sizes = [2, 32], strides = [1, 1]} : vector<2x128xf32> to vector<2x32xf32>
    %198 = arith.negf %197 : vector<2x32xf32>
    %199 = math.exp %198 : vector<2x32xf32>
    %cst_66 = arith.constant 1.000000e+00 : f32
    %200 = vector.broadcast %cst_66 : f32 to vector<2x32xf32>
    %201 = arith.addf %200, %199 : vector<2x32xf32>
    %202 = arith.divf %200, %201 : vector<2x32xf32>
    %203 = vector.extract_strided_slice %190 {offsets = [0, 64], sizes = [2, 32], strides = [1, 1]} : vector<2x128xf32> to vector<2x32xf32>
    %204 = math.tanh %203 : vector<2x32xf32>
    %205 = vector.extract_strided_slice %190 {offsets = [0, 96], sizes = [2, 32], strides = [1, 1]} : vector<2x128xf32> to vector<2x32xf32>
    %206 = arith.negf %205 : vector<2x32xf32>
    %207 = math.exp %206 : vector<2x32xf32>
    %cst_67 = arith.constant 1.000000e+00 : f32
    %208 = vector.broadcast %cst_67 : f32 to vector<2x32xf32>
    %209 = arith.addf %208, %207 : vector<2x32xf32>
    %210 = arith.divf %208, %209 : vector<2x32xf32>
    %211 = arith.mulf %202, %142 : vector<2x32xf32>
    %212 = arith.mulf %196, %204 : vector<2x32xf32>
    %213 = arith.addf %211, %212 : vector<2x32xf32>
    %214 = math.tanh %213 : vector<2x32xf32>
    %215 = arith.mulf %210, %214 : vector<2x32xf32>
    %216 = arith.index_cast %184 : i32 to index
    %c0_68 = arith.constant 0 : index
    %c0_69 = arith.constant 0 : index
    %217 = vector.load %arg6[%216, %c0_68, %c0_69] : memref<8x2x32xf32, #tpu.memory_space<vmem>>, vector<1x2x32xf32>
    %218 = vector.shape_cast %217 : vector<1x2x32xf32> to vector<2x32xf32>
    %219 = vector.shape_cast %215 : vector<2x32xf32> to vector<1x2x32xf32>
    tpu.vector_store %arg6[%216, %c0_68, %c0_69], %219 {strides = array<i32>} : memref<8x2x32xf32, #tpu.memory_space<vmem>>, vector<1x2x32xf32>,
    %c3_i32 = arith.constant 3 : i32
    %220 = arith.index_cast %c3_i32 : i32 to index
    %c0_70 = arith.constant 0 : index
    %c0_71 = arith.constant 0 : index
    %221 = vector.load %arg1[%220, %c0_70, %c0_71] : memref<8x2x128xf32, #tpu.memory_space<vmem>>, vector<1x2x128xf32>
    %222 = vector.shape_cast %221 : vector<1x2x128xf32> to vector<2x128xf32>
    %c0_72 = arith.constant 0 : index
    %c0_73 = arith.constant 0 : index
    %223 = vector.load %arg3[%c0_72, %c0_73] : memref<32x128xf32, #tpu.memory_space<vmem>>, vector<32x128xf32>
    %cst_74 = arith.constant dense<0.000000e+00> : vector<2x128xf32>
    %224 = tpu.matmul %179, %223, %cst_74 {dimension_numbers = #tpu.dot_dimension_numbers<[1], [0], [0], [1], [0, 0, 1, 1], [], []>} : vector<2x32xf32>, vector<32x128xf32>, vector<2x128xf32> -> vector<2x128xf32>
    %225 = arith.addf %222, %224 : vector<2x128xf32>
    %226 = vector.extract_strided_slice %225 {offsets = [0, 0], sizes = [2, 32], strides = [1, 1]} : vector<2x128xf32> to vector<2x32xf32>
    %227 = arith.negf %226 : vector<2x32xf32>
    %228 = math.exp %227 : vector<2x32xf32>
    %cst_75 = arith.constant 1.000000e+00 : f32
    %229 = vector.broadcast %cst_75 : f32 to vector<2x32xf32>
    %230 = arith.addf %229, %228 : vector<2x32xf32>
    %231 = arith.divf %229, %230 : vector<2x32xf32>
    %232 = vector.extract_strided_slice %225 {offsets = [0, 32], sizes = [2, 32], strides = [1, 1]} : vector<2x128xf32> to vector<2x32xf32>
    %233 = arith.negf %232 : vector<2x32xf32>
    %234 = math.exp %233 : vector<2x32xf32>
    %cst_76 = arith.constant 1.000000e+00 : f32
    %235 = vector.broadcast %cst_76 : f32 to vector<2x32xf32>
    %236 = arith.addf %235, %234 : vector<2x32xf32>
    %237 = arith.divf %235, %236 : vector<2x32xf32>
    %238 = vector.extract_strided_slice %225 {offsets = [0, 64], sizes = [2, 32], strides = [1, 1]} : vector<2x128xf32> to vector<2x32xf32>
    %239 = math.tanh %238 : vector<2x32xf32>
    %240 = vector.extract_strided_slice %225 {offsets = [0, 96], sizes = [2, 32], strides = [1, 1]} : vector<2x128xf32> to vector<2x32xf32>
    %241 = arith.negf %240 : vector<2x32xf32>
    %242 = math.exp %241 : vector<2x32xf32>
    %cst_77 = arith.constant 1.000000e+00 : f32
    %243 = vector.broadcast %cst_77 : f32 to vector<2x32xf32>
    %244 = arith.addf %243, %242 : vector<2x32xf32>
    %245 = arith.divf %243, %244 : vector<2x32xf32>
    %246 = arith.mulf %237, %177 : vector<2x32xf32>
    %247 = arith.mulf %231, %239 : vector<2x32xf32>
    %248 = arith.addf %246, %247 : vector<2x32xf32>
    %249 = math.tanh %248 : vector<2x32xf32>
    %250 = arith.mulf %245, %249 : vector<2x32xf32>
    %251 = arith.index_cast %c3_i32 : i32 to index
    %c0_78 = arith.constant 0 : index
    %c0_79 = arith.constant 0 : index
    %252 = vector.load %arg5[%251, %c0_78, %c0_79] : memref<8x2x32xf32, #tpu.memory_space<vmem>>, vector<1x2x32xf32>
    %253 = vector.shape_cast %252 : vector<1x2x32xf32> to vector<2x32xf32>
    %254 = vector.shape_cast %250 : vector<2x32xf32> to vector<1x2x32xf32>
    tpu.vector_store %arg5[%251, %c0_78, %c0_79], %254 {strides = array<i32>} : memref<8x2x32xf32, #tpu.memory_space<vmem>>, vector<1x2x32xf32>,
    %c7_i32_80 = arith.constant 7 : i32
    %255 = arith.subi %c7_i32_80, %c3_i32 : i32
    %256 = arith.index_cast %255 : i32 to index
    %c0_81 = arith.constant 0 : index
    %c0_82 = arith.constant 0 : index
    %257 = vector.load %arg2[%256, %c0_81, %c0_82] : memref<8x2x128xf32, #tpu.memory_space<vmem>>, vector<1x2x128xf32>
    %258 = vector.shape_cast %257 : vector<1x2x128xf32> to vector<2x128xf32>
    %c0_83 = arith.constant 0 : index
    %c0_84 = arith.constant 0 : index
    %259 = vector.load %arg4[%c0_83, %c0_84] : memref<32x128xf32, #tpu.memory_space<vmem>>, vector<32x128xf32>
    %cst_85 = arith.constant dense<0.000000e+00> : vector<2x128xf32>
    %260 = tpu.matmul %215, %259, %cst_85 {dimension_numbers = #tpu.dot_dimension_numbers<[1], [0], [0], [1], [0, 0, 1, 1], [], []>} : vector<2x32xf32>, vector<32x128xf32>, vector<2x128xf32> -> vector<2x128xf32>
    %261 = arith.addf %258, %260 : vector<2x128xf32>
    %262 = vector.extract_strided_slice %261 {offsets = [0, 0], sizes = [2, 32], strides = [1, 1]} : vector<2x128xf32> to vector<2x32xf32>
    %263 = arith.negf %262 : vector<2x32xf32>
    %264 = math.exp %263 : vector<2x32xf32>
    %cst_86 = arith.constant 1.000000e+00 : f32
    %265 = vector.broadcast %cst_86 : f32 to vector<2x32xf32>
    %266 = arith.addf %265, %264 : vector<2x32xf32>
    %267 = arith.divf %265, %266 : vector<2x32xf32>
    %268 = vector.extract_strided_slice %261 {offsets = [0, 32], sizes = [2, 32], strides = [1, 1]} : vector<2x128xf32> to vector<2x32xf32>
    %269 = arith.negf %268 : vector<2x32xf32>
    %270 = math.exp %269 : vector<2x32xf32>
    %cst_87 = arith.constant 1.000000e+00 : f32
    %271 = vector.broadcast %cst_87 : f32 to vector<2x32xf32>
    %272 = arith.addf %271, %270 : vector<2x32xf32>
    %273 = arith.divf %271, %272 : vector<2x32xf32>
    %274 = vector.extract_strided_slice %261 {offsets = [0, 64], sizes = [2, 32], strides = [1, 1]} : vector<2x128xf32> to vector<2x32xf32>
    %275 = math.tanh %274 : vector<2x32xf32>
    %276 = vector.extract_strided_slice %261 {offsets = [0, 96], sizes = [2, 32], strides = [1, 1]} : vector<2x128xf32> to vector<2x32xf32>
    %277 = arith.negf %276 : vector<2x32xf32>
    %278 = math.exp %277 : vector<2x32xf32>
    %cst_88 = arith.constant 1.000000e+00 : f32
    %279 = vector.broadcast %cst_88 : f32 to vector<2x32xf32>
    %280 = arith.addf %279, %278 : vector<2x32xf32>
    %281 = arith.divf %279, %280 : vector<2x32xf32>
    %282 = arith.mulf %273, %213 : vector<2x32xf32>
    %283 = arith.mulf %267, %275 : vector<2x32xf32>
    %284 = arith.addf %282, %283 : vector<2x32xf32>
    %285 = math.tanh %284 : vector<2x32xf32>
    %286 = arith.mulf %281, %285 : vector<2x32xf32>
    %287 = arith.index_cast %255 : i32 to index
    %c0_89 = arith.constant 0 : index
    %c0_90 = arith.constant 0 : index
    %288 = vector.load %arg6[%287, %c0_89, %c0_90] : memref<8x2x32xf32, #tpu.memory_space<vmem>>, vector<1x2x32xf32>
    %289 = vector.shape_cast %288 : vector<1x2x32xf32> to vector<2x32xf32>
    %290 = vector.shape_cast %286 : vector<2x32xf32> to vector<1x2x32xf32>
    tpu.vector_store %arg6[%287, %c0_89, %c0_90], %290 {strides = array<i32>} : memref<8x2x32xf32, #tpu.memory_space<vmem>>, vector<1x2x32xf32>,
    %c4_i32 = arith.constant 4 : i32
    %291 = arith.index_cast %c4_i32 : i32 to index
    %c0_91 = arith.constant 0 : index
    %c0_92 = arith.constant 0 : index
    %292 = vector.load %arg1[%291, %c0_91, %c0_92] : memref<8x2x128xf32, #tpu.memory_space<vmem>>, vector<1x2x128xf32>
    %293 = vector.shape_cast %292 : vector<1x2x128xf32> to vector<2x128xf32>
    %c0_93 = arith.constant 0 : index
    %c0_94 = arith.constant 0 : index
    %294 = vector.load %arg3[%c0_93, %c0_94] : memref<32x128xf32, #tpu.memory_space<vmem>>, vector<32x128xf32>
    %cst_95 = arith.constant dense<0.000000e+00> : vector<2x128xf32>
    %295 = tpu.matmul %250, %294, %cst_95 {dimension_numbers = #tpu.dot_dimension_numbers<[1], [0], [0], [1], [0, 0, 1, 1], [], []>} : vector<2x32xf32>, vector<32x128xf32>, vector<2x128xf32> -> vector<2x128xf32>
    %296 = arith.addf %293, %295 : vector<2x128xf32>
    %297 = vector.extract_strided_slice %296 {offsets = [0, 0], sizes = [2, 32], strides = [1, 1]} : vector<2x128xf32> to vector<2x32xf32>
    %298 = arith.negf %297 : vector<2x32xf32>
    %299 = math.exp %298 : vector<2x32xf32>
    %cst_96 = arith.constant 1.000000e+00 : f32
    %300 = vector.broadcast %cst_96 : f32 to vector<2x32xf32>
    %301 = arith.addf %300, %299 : vector<2x32xf32>
    %302 = arith.divf %300, %301 : vector<2x32xf32>
    %303 = vector.extract_strided_slice %296 {offsets = [0, 32], sizes = [2, 32], strides = [1, 1]} : vector<2x128xf32> to vector<2x32xf32>
    %304 = arith.negf %303 : vector<2x32xf32>
    %305 = math.exp %304 : vector<2x32xf32>
    %cst_97 = arith.constant 1.000000e+00 : f32
    %306 = vector.broadcast %cst_97 : f32 to vector<2x32xf32>
    %307 = arith.addf %306, %305 : vector<2x32xf32>
    %308 = arith.divf %306, %307 : vector<2x32xf32>
    %309 = vector.extract_strided_slice %296 {offsets = [0, 64], sizes = [2, 32], strides = [1, 1]} : vector<2x128xf32> to vector<2x32xf32>
    %310 = math.tanh %309 : vector<2x32xf32>
    %311 = vector.extract_strided_slice %296 {offsets = [0, 96], sizes = [2, 32], strides = [1, 1]} : vector<2x128xf32> to vector<2x32xf32>
    %312 = arith.negf %311 : vector<2x32xf32>
    %313 = math.exp %312 : vector<2x32xf32>
    %cst_98 = arith.constant 1.000000e+00 : f32
    %314 = vector.broadcast %cst_98 : f32 to vector<2x32xf32>
    %315 = arith.addf %314, %313 : vector<2x32xf32>
    %316 = arith.divf %314, %315 : vector<2x32xf32>
    %317 = arith.mulf %308, %248 : vector<2x32xf32>
    %318 = arith.mulf %302, %310 : vector<2x32xf32>
    %319 = arith.addf %317, %318 : vector<2x32xf32>
    %320 = math.tanh %319 : vector<2x32xf32>
    %321 = arith.mulf %316, %320 : vector<2x32xf32>
    %322 = arith.index_cast %c4_i32 : i32 to index
    %c0_99 = arith.constant 0 : index
    %c0_100 = arith.constant 0 : index
    %323 = vector.load %arg5[%322, %c0_99, %c0_100] : memref<8x2x32xf32, #tpu.memory_space<vmem>>, vector<1x2x32xf32>
    %324 = vector.shape_cast %323 : vector<1x2x32xf32> to vector<2x32xf32>
    %325 = vector.shape_cast %321 : vector<2x32xf32> to vector<1x2x32xf32>
    tpu.vector_store %arg5[%322, %c0_99, %c0_100], %325 {strides = array<i32>} : memref<8x2x32xf32, #tpu.memory_space<vmem>>, vector<1x2x32xf32>,
    %c7_i32_101 = arith.constant 7 : i32
    %326 = arith.subi %c7_i32_101, %c4_i32 : i32
    %327 = arith.index_cast %326 : i32 to index
    %c0_102 = arith.constant 0 : index
    %c0_103 = arith.constant 0 : index
    %328 = vector.load %arg2[%327, %c0_102, %c0_103] : memref<8x2x128xf32, #tpu.memory_space<vmem>>, vector<1x2x128xf32>
    %329 = vector.shape_cast %328 : vector<1x2x128xf32> to vector<2x128xf32>
    %c0_104 = arith.constant 0 : index
    %c0_105 = arith.constant 0 : index
    %330 = vector.load %arg4[%c0_104, %c0_105] : memref<32x128xf32, #tpu.memory_space<vmem>>, vector<32x128xf32>
    %cst_106 = arith.constant dense<0.000000e+00> : vector<2x128xf32>
    %331 = tpu.matmul %286, %330, %cst_106 {dimension_numbers = #tpu.dot_dimension_numbers<[1], [0], [0], [1], [0, 0, 1, 1], [], []>} : vector<2x32xf32>, vector<32x128xf32>, vector<2x128xf32> -> vector<2x128xf32>
    %332 = arith.addf %329, %331 : vector<2x128xf32>
    %333 = vector.extract_strided_slice %332 {offsets = [0, 0], sizes = [2, 32], strides = [1, 1]} : vector<2x128xf32> to vector<2x32xf32>
    %334 = arith.negf %333 : vector<2x32xf32>
    %335 = math.exp %334 : vector<2x32xf32>
    %cst_107 = arith.constant 1.000000e+00 : f32
    %336 = vector.broadcast %cst_107 : f32 to vector<2x32xf32>
    %337 = arith.addf %336, %335 : vector<2x32xf32>
    %338 = arith.divf %336, %337 : vector<2x32xf32>
    %339 = vector.extract_strided_slice %332 {offsets = [0, 32], sizes = [2, 32], strides = [1, 1]} : vector<2x128xf32> to vector<2x32xf32>
    %340 = arith.negf %339 : vector<2x32xf32>
    %341 = math.exp %340 : vector<2x32xf32>
    %cst_108 = arith.constant 1.000000e+00 : f32
    %342 = vector.broadcast %cst_108 : f32 to vector<2x32xf32>
    %343 = arith.addf %342, %341 : vector<2x32xf32>
    %344 = arith.divf %342, %343 : vector<2x32xf32>
    %345 = vector.extract_strided_slice %332 {offsets = [0, 64], sizes = [2, 32], strides = [1, 1]} : vector<2x128xf32> to vector<2x32xf32>
    %346 = math.tanh %345 : vector<2x32xf32>
    %347 = vector.extract_strided_slice %332 {offsets = [0, 96], sizes = [2, 32], strides = [1, 1]} : vector<2x128xf32> to vector<2x32xf32>
    %348 = arith.negf %347 : vector<2x32xf32>
    %349 = math.exp %348 : vector<2x32xf32>
    %cst_109 = arith.constant 1.000000e+00 : f32
    %350 = vector.broadcast %cst_109 : f32 to vector<2x32xf32>
    %351 = arith.addf %350, %349 : vector<2x32xf32>
    %352 = arith.divf %350, %351 : vector<2x32xf32>
    %353 = arith.mulf %344, %284 : vector<2x32xf32>
    %354 = arith.mulf %338, %346 : vector<2x32xf32>
    %355 = arith.addf %353, %354 : vector<2x32xf32>
    %356 = math.tanh %355 : vector<2x32xf32>
    %357 = arith.mulf %352, %356 : vector<2x32xf32>
    %358 = arith.index_cast %326 : i32 to index
    %c0_110 = arith.constant 0 : index
    %c0_111 = arith.constant 0 : index
    %359 = vector.load %arg6[%358, %c0_110, %c0_111] : memref<8x2x32xf32, #tpu.memory_space<vmem>>, vector<1x2x32xf32>
    %360 = vector.shape_cast %359 : vector<1x2x32xf32> to vector<2x32xf32>
    %361 = vector.shape_cast %357 : vector<2x32xf32> to vector<1x2x32xf32>
    tpu.vector_store %arg6[%358, %c0_110, %c0_111], %361 {strides = array<i32>} : memref<8x2x32xf32, #tpu.memory_space<vmem>>, vector<1x2x32xf32>,
    %c5_i32 = arith.constant 5 : i32
    %362 = arith.index_cast %c5_i32 : i32 to index
    %c0_112 = arith.constant 0 : index
    %c0_113 = arith.constant 0 : index
    %363 = vector.load %arg1[%362, %c0_112, %c0_113] : memref<8x2x128xf32, #tpu.memory_space<vmem>>, vector<1x2x128xf32>
    %364 = vector.shape_cast %363 : vector<1x2x128xf32> to vector<2x128xf32>
    %c0_114 = arith.constant 0 : index
    %c0_115 = arith.constant 0 : index
    %365 = vector.load %arg3[%c0_114, %c0_115] : memref<32x128xf32, #tpu.memory_space<vmem>>, vector<32x128xf32>
    %cst_116 = arith.constant dense<0.000000e+00> : vector<2x128xf32>
    %366 = tpu.matmul %321, %365, %cst_116 {dimension_numbers = #tpu.dot_dimension_numbers<[1], [0], [0], [1], [0, 0, 1, 1], [], []>} : vector<2x32xf32>, vector<32x128xf32>, vector<2x128xf32> -> vector<2x128xf32>
    %367 = arith.addf %364, %366 : vector<2x128xf32>
    %368 = vector.extract_strided_slice %367 {offsets = [0, 0], sizes = [2, 32], strides = [1, 1]} : vector<2x128xf32> to vector<2x32xf32>
    %369 = arith.negf %368 : vector<2x32xf32>
    %370 = math.exp %369 : vector<2x32xf32>
    %cst_117 = arith.constant 1.000000e+00 : f32
    %371 = vector.broadcast %cst_117 : f32 to vector<2x32xf32>
    %372 = arith.addf %371, %370 : vector<2x32xf32>
    %373 = arith.divf %371, %372 : vector<2x32xf32>
    %374 = vector.extract_strided_slice %367 {offsets = [0, 32], sizes = [2, 32], strides = [1, 1]} : vector<2x128xf32> to vector<2x32xf32>
    %375 = arith.negf %374 : vector<2x32xf32>
    %376 = math.exp %375 : vector<2x32xf32>
    %cst_118 = arith.constant 1.000000e+00 : f32
    %377 = vector.broadcast %cst_118 : f32 to vector<2x32xf32>
    %378 = arith.addf %377, %376 : vector<2x32xf32>
    %379 = arith.divf %377, %378 : vector<2x32xf32>
    %380 = vector.extract_strided_slice %367 {offsets = [0, 64], sizes = [2, 32], strides = [1, 1]} : vector<2x128xf32> to vector<2x32xf32>
    %381 = math.tanh %380 : vector<2x32xf32>
    %382 = vector.extract_strided_slice %367 {offsets = [0, 96], sizes = [2, 32], strides = [1, 1]} : vector<2x128xf32> to vector<2x32xf32>
    %383 = arith.negf %382 : vector<2x32xf32>
    %384 = math.exp %383 : vector<2x32xf32>
    %cst_119 = arith.constant 1.000000e+00 : f32
    %385 = vector.broadcast %cst_119 : f32 to vector<2x32xf32>
    %386 = arith.addf %385, %384 : vector<2x32xf32>
    %387 = arith.divf %385, %386 : vector<2x32xf32>
    %388 = arith.mulf %379, %319 : vector<2x32xf32>
    %389 = arith.mulf %373, %381 : vector<2x32xf32>
    %390 = arith.addf %388, %389 : vector<2x32xf32>
    %391 = math.tanh %390 : vector<2x32xf32>
    %392 = arith.mulf %387, %391 : vector<2x32xf32>
    %393 = arith.index_cast %c5_i32 : i32 to index
    %c0_120 = arith.constant 0 : index
    %c0_121 = arith.constant 0 : index
    %394 = vector.load %arg5[%393, %c0_120, %c0_121] : memref<8x2x32xf32, #tpu.memory_space<vmem>>, vector<1x2x32xf32>
    %395 = vector.shape_cast %394 : vector<1x2x32xf32> to vector<2x32xf32>
    %396 = vector.shape_cast %392 : vector<2x32xf32> to vector<1x2x32xf32>
    tpu.vector_store %arg5[%393, %c0_120, %c0_121], %396 {strides = array<i32>} : memref<8x2x32xf32, #tpu.memory_space<vmem>>, vector<1x2x32xf32>,
    %c7_i32_122 = arith.constant 7 : i32
    %397 = arith.subi %c7_i32_122, %c5_i32 : i32
    %398 = arith.index_cast %397 : i32 to index
    %c0_123 = arith.constant 0 : index
    %c0_124 = arith.constant 0 : index
    %399 = vector.load %arg2[%398, %c0_123, %c0_124] : memref<8x2x128xf32, #tpu.memory_space<vmem>>, vector<1x2x128xf32>
    %400 = vector.shape_cast %399 : vector<1x2x128xf32> to vector<2x128xf32>
    %c0_125 = arith.constant 0 : index
    %c0_126 = arith.constant 0 : index
    %401 = vector.load %arg4[%c0_125, %c0_126] : memref<32x128xf32, #tpu.memory_space<vmem>>, vector<32x128xf32>
    %cst_127 = arith.constant dense<0.000000e+00> : vector<2x128xf32>
    %402 = tpu.matmul %357, %401, %cst_127 {dimension_numbers = #tpu.dot_dimension_numbers<[1], [0], [0], [1], [0, 0, 1, 1], [], []>} : vector<2x32xf32>, vector<32x128xf32>, vector<2x128xf32> -> vector<2x128xf32>
    %403 = arith.addf %400, %402 : vector<2x128xf32>
    %404 = vector.extract_strided_slice %403 {offsets = [0, 0], sizes = [2, 32], strides = [1, 1]} : vector<2x128xf32> to vector<2x32xf32>
    %405 = arith.negf %404 : vector<2x32xf32>
    %406 = math.exp %405 : vector<2x32xf32>
    %cst_128 = arith.constant 1.000000e+00 : f32
    %407 = vector.broadcast %cst_128 : f32 to vector<2x32xf32>
    %408 = arith.addf %407, %406 : vector<2x32xf32>
    %409 = arith.divf %407, %408 : vector<2x32xf32>
    %410 = vector.extract_strided_slice %403 {offsets = [0, 32], sizes = [2, 32], strides = [1, 1]} : vector<2x128xf32> to vector<2x32xf32>
    %411 = arith.negf %410 : vector<2x32xf32>
    %412 = math.exp %411 : vector<2x32xf32>
    %cst_129 = arith.constant 1.000000e+00 : f32
    %413 = vector.broadcast %cst_129 : f32 to vector<2x32xf32>
    %414 = arith.addf %413, %412 : vector<2x32xf32>
    %415 = arith.divf %413, %414 : vector<2x32xf32>
    %416 = vector.extract_strided_slice %403 {offsets = [0, 64], sizes = [2, 32], strides = [1, 1]} : vector<2x128xf32> to vector<2x32xf32>
    %417 = math.tanh %416 : vector<2x32xf32>
    %418 = vector.extract_strided_slice %403 {offsets = [0, 96], sizes = [2, 32], strides = [1, 1]} : vector<2x128xf32> to vector<2x32xf32>
    %419 = arith.negf %418 : vector<2x32xf32>
    %420 = math.exp %419 : vector<2x32xf32>
    %cst_130 = arith.constant 1.000000e+00 : f32
    %421 = vector.broadcast %cst_130 : f32 to vector<2x32xf32>
    %422 = arith.addf %421, %420 : vector<2x32xf32>
    %423 = arith.divf %421, %422 : vector<2x32xf32>
    %424 = arith.mulf %415, %355 : vector<2x32xf32>
    %425 = arith.mulf %409, %417 : vector<2x32xf32>
    %426 = arith.addf %424, %425 : vector<2x32xf32>
    %427 = math.tanh %426 : vector<2x32xf32>
    %428 = arith.mulf %423, %427 : vector<2x32xf32>
    %429 = arith.index_cast %397 : i32 to index
    %c0_131 = arith.constant 0 : index
    %c0_132 = arith.constant 0 : index
    %430 = vector.load %arg6[%429, %c0_131, %c0_132] : memref<8x2x32xf32, #tpu.memory_space<vmem>>, vector<1x2x32xf32>
    %431 = vector.shape_cast %430 : vector<1x2x32xf32> to vector<2x32xf32>
    %432 = vector.shape_cast %428 : vector<2x32xf32> to vector<1x2x32xf32>
    tpu.vector_store %arg6[%429, %c0_131, %c0_132], %432 {strides = array<i32>} : memref<8x2x32xf32, #tpu.memory_space<vmem>>, vector<1x2x32xf32>,
    %c6_i32 = arith.constant 6 : i32
    %433 = arith.index_cast %c6_i32 : i32 to index
    %c0_133 = arith.constant 0 : index
    %c0_134 = arith.constant 0 : index
    %434 = vector.load %arg1[%433, %c0_133, %c0_134] : memref<8x2x128xf32, #tpu.memory_space<vmem>>, vector<1x2x128xf32>
    %435 = vector.shape_cast %434 : vector<1x2x128xf32> to vector<2x128xf32>
    %c0_135 = arith.constant 0 : index
    %c0_136 = arith.constant 0 : index
    %436 = vector.load %arg3[%c0_135, %c0_136] : memref<32x128xf32, #tpu.memory_space<vmem>>, vector<32x128xf32>
    %cst_137 = arith.constant dense<0.000000e+00> : vector<2x128xf32>
    %437 = tpu.matmul %392, %436, %cst_137 {dimension_numbers = #tpu.dot_dimension_numbers<[1], [0], [0], [1], [0, 0, 1, 1], [], []>} : vector<2x32xf32>, vector<32x128xf32>, vector<2x128xf32> -> vector<2x128xf32>
    %438 = arith.addf %435, %437 : vector<2x128xf32>
    %439 = vector.extract_strided_slice %438 {offsets = [0, 0], sizes = [2, 32], strides = [1, 1]} : vector<2x128xf32> to vector<2x32xf32>
    %440 = arith.negf %439 : vector<2x32xf32>
    %441 = math.exp %440 : vector<2x32xf32>
    %cst_138 = arith.constant 1.000000e+00 : f32
    %442 = vector.broadcast %cst_138 : f32 to vector<2x32xf32>
    %443 = arith.addf %442, %441 : vector<2x32xf32>
    %444 = arith.divf %442, %443 : vector<2x32xf32>
    %445 = vector.extract_strided_slice %438 {offsets = [0, 32], sizes = [2, 32], strides = [1, 1]} : vector<2x128xf32> to vector<2x32xf32>
    %446 = arith.negf %445 : vector<2x32xf32>
    %447 = math.exp %446 : vector<2x32xf32>
    %cst_139 = arith.constant 1.000000e+00 : f32
    %448 = vector.broadcast %cst_139 : f32 to vector<2x32xf32>
    %449 = arith.addf %448, %447 : vector<2x32xf32>
    %450 = arith.divf %448, %449 : vector<2x32xf32>
    %451 = vector.extract_strided_slice %438 {offsets = [0, 64], sizes = [2, 32], strides = [1, 1]} : vector<2x128xf32> to vector<2x32xf32>
    %452 = math.tanh %451 : vector<2x32xf32>
    %453 = vector.extract_strided_slice %438 {offsets = [0, 96], sizes = [2, 32], strides = [1, 1]} : vector<2x128xf32> to vector<2x32xf32>
    %454 = arith.negf %453 : vector<2x32xf32>
    %455 = math.exp %454 : vector<2x32xf32>
    %cst_140 = arith.constant 1.000000e+00 : f32
    %456 = vector.broadcast %cst_140 : f32 to vector<2x32xf32>
    %457 = arith.addf %456, %455 : vector<2x32xf32>
    %458 = arith.divf %456, %457 : vector<2x32xf32>
    %459 = arith.mulf %450, %390 : vector<2x32xf32>
    %460 = arith.mulf %444, %452 : vector<2x32xf32>
    %461 = arith.addf %459, %460 : vector<2x32xf32>
    %462 = math.tanh %461 : vector<2x32xf32>
    %463 = arith.mulf %458, %462 : vector<2x32xf32>
    %464 = arith.index_cast %c6_i32 : i32 to index
    %c0_141 = arith.constant 0 : index
    %c0_142 = arith.constant 0 : index
    %465 = vector.load %arg5[%464, %c0_141, %c0_142] : memref<8x2x32xf32, #tpu.memory_space<vmem>>, vector<1x2x32xf32>
    %466 = vector.shape_cast %465 : vector<1x2x32xf32> to vector<2x32xf32>
    %467 = vector.shape_cast %463 : vector<2x32xf32> to vector<1x2x32xf32>
    tpu.vector_store %arg5[%464, %c0_141, %c0_142], %467 {strides = array<i32>} : memref<8x2x32xf32, #tpu.memory_space<vmem>>, vector<1x2x32xf32>,
    %c7_i32_143 = arith.constant 7 : i32
    %468 = arith.subi %c7_i32_143, %c6_i32 : i32
    %469 = arith.index_cast %468 : i32 to index
    %c0_144 = arith.constant 0 : index
    %c0_145 = arith.constant 0 : index
    %470 = vector.load %arg2[%469, %c0_144, %c0_145] : memref<8x2x128xf32, #tpu.memory_space<vmem>>, vector<1x2x128xf32>
    %471 = vector.shape_cast %470 : vector<1x2x128xf32> to vector<2x128xf32>
    %c0_146 = arith.constant 0 : index
    %c0_147 = arith.constant 0 : index
    %472 = vector.load %arg4[%c0_146, %c0_147] : memref<32x128xf32, #tpu.memory_space<vmem>>, vector<32x128xf32>
    %cst_148 = arith.constant dense<0.000000e+00> : vector<2x128xf32>
    %473 = tpu.matmul %428, %472, %cst_148 {dimension_numbers = #tpu.dot_dimension_numbers<[1], [0], [0], [1], [0, 0, 1, 1], [], []>} : vector<2x32xf32>, vector<32x128xf32>, vector<2x128xf32> -> vector<2x128xf32>
    %474 = arith.addf %471, %473 : vector<2x128xf32>
    %475 = vector.extract_strided_slice %474 {offsets = [0, 0], sizes = [2, 32], strides = [1, 1]} : vector<2x128xf32> to vector<2x32xf32>
    %476 = arith.negf %475 : vector<2x32xf32>
    %477 = math.exp %476 : vector<2x32xf32>
    %cst_149 = arith.constant 1.000000e+00 : f32
    %478 = vector.broadcast %cst_149 : f32 to vector<2x32xf32>
    %479 = arith.addf %478, %477 : vector<2x32xf32>
    %480 = arith.divf %478, %479 : vector<2x32xf32>
    %481 = vector.extract_strided_slice %474 {offsets = [0, 32], sizes = [2, 32], strides = [1, 1]} : vector<2x128xf32> to vector<2x32xf32>
    %482 = arith.negf %481 : vector<2x32xf32>
    %483 = math.exp %482 : vector<2x32xf32>
    %cst_150 = arith.constant 1.000000e+00 : f32
    %484 = vector.broadcast %cst_150 : f32 to vector<2x32xf32>
    %485 = arith.addf %484, %483 : vector<2x32xf32>
    %486 = arith.divf %484, %485 : vector<2x32xf32>
    %487 = vector.extract_strided_slice %474 {offsets = [0, 64], sizes = [2, 32], strides = [1, 1]} : vector<2x128xf32> to vector<2x32xf32>
    %488 = math.tanh %487 : vector<2x32xf32>
    %489 = vector.extract_strided_slice %474 {offsets = [0, 96], sizes = [2, 32], strides = [1, 1]} : vector<2x128xf32> to vector<2x32xf32>
    %490 = arith.negf %489 : vector<2x32xf32>
    %491 = math.exp %490 : vector<2x32xf32>
    %cst_151 = arith.constant 1.000000e+00 : f32
    %492 = vector.broadcast %cst_151 : f32 to vector<2x32xf32>
    %493 = arith.addf %492, %491 : vector<2x32xf32>
    %494 = arith.divf %492, %493 : vector<2x32xf32>
    %495 = arith.mulf %486, %426 : vector<2x32xf32>
    %496 = arith.mulf %480, %488 : vector<2x32xf32>
    %497 = arith.addf %495, %496 : vector<2x32xf32>
    %498 = math.tanh %497 : vector<2x32xf32>
    %499 = arith.mulf %494, %498 : vector<2x32xf32>
    %500 = arith.index_cast %468 : i32 to index
    %c0_152 = arith.constant 0 : index
    %c0_153 = arith.constant 0 : index
    %501 = vector.load %arg6[%500, %c0_152, %c0_153] : memref<8x2x32xf32, #tpu.memory_space<vmem>>, vector<1x2x32xf32>
    %502 = vector.shape_cast %501 : vector<1x2x32xf32> to vector<2x32xf32>
    %503 = vector.shape_cast %499 : vector<2x32xf32> to vector<1x2x32xf32>
    tpu.vector_store %arg6[%500, %c0_152, %c0_153], %503 {strides = array<i32>} : memref<8x2x32xf32, #tpu.memory_space<vmem>>, vector<1x2x32xf32>,
    %c7_i32_154 = arith.constant 7 : i32
    %504 = arith.index_cast %c7_i32_154 : i32 to index
    %c0_155 = arith.constant 0 : index
    %c0_156 = arith.constant 0 : index
    %505 = vector.load %arg1[%504, %c0_155, %c0_156] : memref<8x2x128xf32, #tpu.memory_space<vmem>>, vector<1x2x128xf32>
    %506 = vector.shape_cast %505 : vector<1x2x128xf32> to vector<2x128xf32>
    %c0_157 = arith.constant 0 : index
    %c0_158 = arith.constant 0 : index
    %507 = vector.load %arg3[%c0_157, %c0_158] : memref<32x128xf32, #tpu.memory_space<vmem>>, vector<32x128xf32>
    %cst_159 = arith.constant dense<0.000000e+00> : vector<2x128xf32>
    %508 = tpu.matmul %463, %507, %cst_159 {dimension_numbers = #tpu.dot_dimension_numbers<[1], [0], [0], [1], [0, 0, 1, 1], [], []>} : vector<2x32xf32>, vector<32x128xf32>, vector<2x128xf32> -> vector<2x128xf32>
    %509 = arith.addf %506, %508 : vector<2x128xf32>
    %510 = vector.extract_strided_slice %509 {offsets = [0, 0], sizes = [2, 32], strides = [1, 1]} : vector<2x128xf32> to vector<2x32xf32>
    %511 = arith.negf %510 : vector<2x32xf32>
    %512 = math.exp %511 : vector<2x32xf32>
    %cst_160 = arith.constant 1.000000e+00 : f32
    %513 = vector.broadcast %cst_160 : f32 to vector<2x32xf32>
    %514 = arith.addf %513, %512 : vector<2x32xf32>
    %515 = arith.divf %513, %514 : vector<2x32xf32>
    %516 = vector.extract_strided_slice %509 {offsets = [0, 32], sizes = [2, 32], strides = [1, 1]} : vector<2x128xf32> to vector<2x32xf32>
    %517 = arith.negf %516 : vector<2x32xf32>
    %518 = math.exp %517 : vector<2x32xf32>
    %cst_161 = arith.constant 1.000000e+00 : f32
    %519 = vector.broadcast %cst_161 : f32 to vector<2x32xf32>
    %520 = arith.addf %519, %518 : vector<2x32xf32>
    %521 = arith.divf %519, %520 : vector<2x32xf32>
    %522 = vector.extract_strided_slice %509 {offsets = [0, 64], sizes = [2, 32], strides = [1, 1]} : vector<2x128xf32> to vector<2x32xf32>
    %523 = math.tanh %522 : vector<2x32xf32>
    %524 = vector.extract_strided_slice %509 {offsets = [0, 96], sizes = [2, 32], strides = [1, 1]} : vector<2x128xf32> to vector<2x32xf32>
    %525 = arith.negf %524 : vector<2x32xf32>
    %526 = math.exp %525 : vector<2x32xf32>
    %cst_162 = arith.constant 1.000000e+00 : f32
    %527 = vector.broadcast %cst_162 : f32 to vector<2x32xf32>
    %528 = arith.addf %527, %526 : vector<2x32xf32>
    %529 = arith.divf %527, %528 : vector<2x32xf32>
    %530 = arith.mulf %521, %461 : vector<2x32xf32>
    %531 = arith.mulf %515, %523 : vector<2x32xf32>
    %532 = arith.addf %530, %531 : vector<2x32xf32>
    %533 = math.tanh %532 : vector<2x32xf32>
    %534 = arith.mulf %529, %533 : vector<2x32xf32>
    %535 = arith.index_cast %c7_i32_154 : i32 to index
    %c0_163 = arith.constant 0 : index
    %c0_164 = arith.constant 0 : index
    %536 = vector.load %arg5[%535, %c0_163, %c0_164] : memref<8x2x32xf32, #tpu.memory_space<vmem>>, vector<1x2x32xf32>
    %537 = vector.shape_cast %536 : vector<1x2x32xf32> to vector<2x32xf32>
    %538 = vector.shape_cast %534 : vector<2x32xf32> to vector<1x2x32xf32>
    tpu.vector_store %arg5[%535, %c0_163, %c0_164], %538 {strides = array<i32>} : memref<8x2x32xf32, #tpu.memory_space<vmem>>, vector<1x2x32xf32>,
    %c7_i32_165 = arith.constant 7 : i32
    %539 = arith.subi %c7_i32_165, %c7_i32_154 : i32
    %540 = arith.index_cast %539 : i32 to index
    %c0_166 = arith.constant 0 : index
    %c0_167 = arith.constant 0 : index
    %541 = vector.load %arg2[%540, %c0_166, %c0_167] : memref<8x2x128xf32, #tpu.memory_space<vmem>>, vector<1x2x128xf32>
    %542 = vector.shape_cast %541 : vector<1x2x128xf32> to vector<2x128xf32>
    %c0_168 = arith.constant 0 : index
    %c0_169 = arith.constant 0 : index
    %543 = vector.load %arg4[%c0_168, %c0_169] : memref<32x128xf32, #tpu.memory_space<vmem>>, vector<32x128xf32>
    %cst_170 = arith.constant dense<0.000000e+00> : vector<2x128xf32>
    %544 = tpu.matmul %499, %543, %cst_170 {dimension_numbers = #tpu.dot_dimension_numbers<[1], [0], [0], [1], [0, 0, 1, 1], [], []>} : vector<2x32xf32>, vector<32x128xf32>, vector<2x128xf32> -> vector<2x128xf32>
    %545 = arith.addf %542, %544 : vector<2x128xf32>
    %546 = vector.extract_strided_slice %545 {offsets = [0, 0], sizes = [2, 32], strides = [1, 1]} : vector<2x128xf32> to vector<2x32xf32>
    %547 = arith.negf %546 : vector<2x32xf32>
    %548 = math.exp %547 : vector<2x32xf32>
    %cst_171 = arith.constant 1.000000e+00 : f32
    %549 = vector.broadcast %cst_171 : f32 to vector<2x32xf32>
    %550 = arith.addf %549, %548 : vector<2x32xf32>
    %551 = arith.divf %549, %550 : vector<2x32xf32>
    %552 = vector.extract_strided_slice %545 {offsets = [0, 32], sizes = [2, 32], strides = [1, 1]} : vector<2x128xf32> to vector<2x32xf32>
    %553 = arith.negf %552 : vector<2x32xf32>
    %554 = math.exp %553 : vector<2x32xf32>
    %cst_172 = arith.constant 1.000000e+00 : f32
    %555 = vector.broadcast %cst_172 : f32 to vector<2x32xf32>
    %556 = arith.addf %555, %554 : vector<2x32xf32>
    %557 = arith.divf %555, %556 : vector<2x32xf32>
    %558 = vector.extract_strided_slice %545 {offsets = [0, 64], sizes = [2, 32], strides = [1, 1]} : vector<2x128xf32> to vector<2x32xf32>
    %559 = math.tanh %558 : vector<2x32xf32>
    %560 = vector.extract_strided_slice %545 {offsets = [0, 96], sizes = [2, 32], strides = [1, 1]} : vector<2x128xf32> to vector<2x32xf32>
    %561 = arith.negf %560 : vector<2x32xf32>
    %562 = math.exp %561 : vector<2x32xf32>
    %cst_173 = arith.constant 1.000000e+00 : f32
    %563 = vector.broadcast %cst_173 : f32 to vector<2x32xf32>
    %564 = arith.addf %563, %562 : vector<2x32xf32>
    %565 = arith.divf %563, %564 : vector<2x32xf32>
    %566 = arith.mulf %557, %497 : vector<2x32xf32>
    %567 = arith.mulf %551, %559 : vector<2x32xf32>
    %568 = arith.addf %566, %567 : vector<2x32xf32>
    %569 = math.tanh %568 : vector<2x32xf32>
    %570 = arith.mulf %565, %569 : vector<2x32xf32>
    %571 = arith.index_cast %539 : i32 to index
    %c0_174 = arith.constant 0 : index
    %c0_175 = arith.constant 0 : index
    %572 = vector.load %arg6[%571, %c0_174, %c0_175] : memref<8x2x32xf32, #tpu.memory_space<vmem>>, vector<1x2x32xf32>
    %573 = vector.shape_cast %572 : vector<1x2x32xf32> to vector<2x32xf32>
    %574 = vector.shape_cast %570 : vector<2x32xf32> to vector<1x2x32xf32>
    tpu.vector_store %arg6[%571, %c0_174, %c0_175], %574 {strides = array<i32>} : memref<8x2x32xf32, #tpu.memory_space<vmem>>, vector<1x2x32xf32>,
    %c8_i32 = arith.constant 8 : i32
    %c0_176 = arith.constant 0 : index
    %c0_177 = arith.constant 0 : index
    %575 = vector.load %arg7[%c0_176, %c0_177] : memref<2x32xf32, #tpu.memory_space<vmem>>, vector<2x32xf32>
    tpu.vector_store %arg7[%c0_176, %c0_177], %534 {strides = array<i32>} : memref<2x32xf32, #tpu.memory_space<vmem>>, vector<2x32xf32>,
    %c0_178 = arith.constant 0 : index
    %c0_179 = arith.constant 0 : index
    %576 = vector.load %arg8[%c0_178, %c0_179] : memref<2x32xf32, #tpu.memory_space<vmem>>, vector<2x32xf32>
    tpu.vector_store %arg8[%c0_178, %c0_179], %532 {strides = array<i32>} : memref<2x32xf32, #tpu.memory_space<vmem>>, vector<2x32xf32>,
    %c0_180 = arith.constant 0 : index
    %c0_181 = arith.constant 0 : index
    %577 = vector.load %arg9[%c0_180, %c0_181] : memref<2x32xf32, #tpu.memory_space<vmem>>, vector<2x32xf32>
    tpu.vector_store %arg9[%c0_180, %c0_181], %570 {strides = array<i32>} : memref<2x32xf32, #tpu.memory_space<vmem>>, vector<2x32xf32>,
    %c0_182 = arith.constant 0 : index
    %c0_183 = arith.constant 0 : index
    %578 = vector.load %arg10[%c0_182, %c0_183] : memref<2x32xf32, #tpu.memory_space<vmem>>, vector<2x32xf32>
    tpu.vector_store %arg10[%c0_182, %c0_183], %568 {strides = array<i32>} : memref<2x32xf32, #tpu.memory_space<vmem>>, vector<2x32xf32>,
    return
  }
  func.func @transform_0(%arg0: i32) -> (i32, i32, i32) {
    %c0_i32 = arith.constant 0 : i32
    %c0_i32_0 = arith.constant 0 : i32
    %c0_i32_1 = arith.constant 0 : i32
    return %arg0, %c0_i32, %c0_i32_0 : i32, i32, i32
  }
  func.func @transform_1(%arg0: i32) -> (i32, i32, i32) {
    %c0_i32 = arith.constant 0 : i32
    %0 = arith.subi %c0_i32, %arg0 : i32
    %c0_i32_0 = arith.constant 0 : i32
    %c0_i32_1 = arith.constant 0 : i32
    %c0_i32_2 = arith.constant 0 : i32
    return %0, %c0_i32_0, %c0_i32_1 : i32, i32, i32
  }
  func.func @transform_2(%arg0: i32) -> (i32, i32) {
    %c0_i32 = arith.constant 0 : i32
    %c0_i32_0 = arith.constant 0 : i32
    %c0_i32_1 = arith.constant 0 : i32
    return %c0_i32, %c0_i32_0 : i32, i32
  }
  func.func @transform_3(%arg0: i32) -> (i32, i32) {
    %c0_i32 = arith.constant 0 : i32
    %c0_i32_0 = arith.constant 0 : i32
    %c0_i32_1 = arith.constant 0 : i32
    return %c0_i32, %c0_i32_0 : i32, i32
  }
  func.func @transform_4(%arg0: i32) -> (i32, i32, i32) {
    %c0_i32 = arith.constant 0 : i32
    %c0_i32_0 = arith.constant 0 : i32
    %c0_i32_1 = arith.constant 0 : i32
    return %arg0, %c0_i32, %c0_i32_0 : i32, i32, i32
  }
  func.func @transform_5(%arg0: i32) -> (i32, i32, i32) {
    %c0_i32 = arith.constant 0 : i32
    %0 = arith.subi %c0_i32, %arg0 : i32
    %c0_i32_0 = arith.constant 0 : i32
    %c0_i32_1 = arith.constant 0 : i32
    %c0_i32_2 = arith.constant 0 : i32
    return %0, %c0_i32_0, %c0_i32_1 : i32, i32, i32
  }
}

module attributes {stable_mosaic.version = 11 : i64} {
  func.func @kernel(%arg0: i32, %arg1: i32, %arg2: memref<16x32xf32, #tpu.memory_space<vmem>>, %arg3: memref<16x32xf32, #tpu.memory_space<vmem>>, %arg4: memref<32x128xf32, #tpu.memory_space<vmem>>, %arg5: memref<32x128xf32, #tpu.memory_space<vmem>>, %arg6: memref<32x128xf32, #tpu.memory_space<vmem>>, %arg7: memref<32x128xf32, #tpu.memory_space<vmem>>, %arg8: memref<1x128xf32, #tpu.memory_space<vmem>>, %arg9: memref<1x128xf32, #tpu.memory_space<vmem>>, %arg10: memref<16x128xf32, #tpu.memory_space<vmem>>, %arg11: memref<16x128xf32, #tpu.memory_space<vmem>>) attributes {dimension_semantics = [#tpu.dimension_semantics<parallel>, #tpu.dimension_semantics<parallel>], iteration_bounds = array<i64: 1, 1>, scalar_prefetch = 0 : i64, scratch_operands = 0 : i64, tpu.core_type = #tpu.core_type<tc>, window_params = [{transform_indices = @transform_0, window_bounds = array<i64: 16, 32>}, {transform_indices = @transform_1, window_bounds = array<i64: 16, 32>}, {transform_indices = @transform_2, window_bounds = array<i64: 32, 128>}, {transform_indices = @transform_3, window_bounds = array<i64: 32, 128>}, {transform_indices = @transform_4, window_bounds = array<i64: 32, 128>}, {transform_indices = @transform_5, window_bounds = array<i64: 32, 128>}, {transform_indices = @transform_6, window_bounds = array<i64: 1, 128>}, {transform_indices = @transform_7, window_bounds = array<i64: 1, 128>}, {transform_indices = @transform_8, window_bounds = array<i64: 16, 128>}, {transform_indices = @transform_9, window_bounds = array<i64: 16, 128>}]} {
    %c0 = arith.constant 0 : index
    %c0_0 = arith.constant 0 : index
    %0 = vector.load %arg2[%c0, %c0_0] : memref<16x32xf32, #tpu.memory_space<vmem>>, vector<16x32xf32>
    %c0_1 = arith.constant 0 : index
    %c0_2 = arith.constant 0 : index
    %1 = vector.load %arg3[%c0_1, %c0_2] : memref<16x32xf32, #tpu.memory_space<vmem>>, vector<16x32xf32>
    %c0_3 = arith.constant 0 : index
    %c0_4 = arith.constant 0 : index
    %2 = vector.load %arg8[%c0_3, %c0_4] : memref<1x128xf32, #tpu.memory_space<vmem>>, vector<1x128xf32>
    %c0_5 = arith.constant 0 : index
    %c0_6 = arith.constant 0 : index
    %3 = vector.load %arg4[%c0_5, %c0_6] : memref<32x128xf32, #tpu.memory_space<vmem>>, vector<32x128xf32>
    %cst = arith.constant dense<0.000000e+00> : vector<16x128xf32>
    %4 = tpu.matmul %0, %3, %cst {dimension_numbers = #tpu.dot_dimension_numbers<[1], [0], [0], [1], [0, 0, 1, 1], [], []>} : vector<16x32xf32>, vector<32x128xf32>, vector<16x128xf32> -> vector<16x128xf32>
    %5 = vector.broadcast %2 : vector<1x128xf32> to vector<16x128xf32>
    %6 = arith.addf %5, %4 : vector<16x128xf32>
    %c0_7 = arith.constant 0 : index
    %c0_8 = arith.constant 0 : index
    %7 = vector.load %arg6[%c0_7, %c0_8] : memref<32x128xf32, #tpu.memory_space<vmem>>, vector<32x128xf32>
    %cst_9 = arith.constant dense<0.000000e+00> : vector<16x128xf32>
    %8 = tpu.matmul %1, %7, %cst_9 {dimension_numbers = #tpu.dot_dimension_numbers<[1], [0], [0], [1], [0, 0, 1, 1], [], []>} : vector<16x32xf32>, vector<32x128xf32>, vector<16x128xf32> -> vector<16x128xf32>
    %9 = arith.addf %6, %8 : vector<16x128xf32>
    %c0_10 = arith.constant 0 : index
    %c0_11 = arith.constant 0 : index
    %10 = vector.load %arg10[%c0_10, %c0_11] : memref<16x128xf32, #tpu.memory_space<vmem>>, vector<16x128xf32>
    tpu.vector_store %arg10[%c0_10, %c0_11], %9 {strides = array<i32>} : memref<16x128xf32, #tpu.memory_space<vmem>>, vector<16x128xf32>,
    %c0_12 = arith.constant 0 : index
    %c0_13 = arith.constant 0 : index
    %11 = vector.load %arg9[%c0_12, %c0_13] : memref<1x128xf32, #tpu.memory_space<vmem>>, vector<1x128xf32>
    %c0_14 = arith.constant 0 : index
    %c0_15 = arith.constant 0 : index
    %12 = vector.load %arg5[%c0_14, %c0_15] : memref<32x128xf32, #tpu.memory_space<vmem>>, vector<32x128xf32>
    %cst_16 = arith.constant dense<0.000000e+00> : vector<16x128xf32>
    %13 = tpu.matmul %0, %12, %cst_16 {dimension_numbers = #tpu.dot_dimension_numbers<[1], [0], [0], [1], [0, 0, 1, 1], [], []>} : vector<16x32xf32>, vector<32x128xf32>, vector<16x128xf32> -> vector<16x128xf32>
    %14 = vector.broadcast %11 : vector<1x128xf32> to vector<16x128xf32>
    %15 = arith.addf %14, %13 : vector<16x128xf32>
    %c0_17 = arith.constant 0 : index
    %c0_18 = arith.constant 0 : index
    %16 = vector.load %arg7[%c0_17, %c0_18] : memref<32x128xf32, #tpu.memory_space<vmem>>, vector<32x128xf32>
    %cst_19 = arith.constant dense<0.000000e+00> : vector<16x128xf32>
    %17 = tpu.matmul %1, %16, %cst_19 {dimension_numbers = #tpu.dot_dimension_numbers<[1], [0], [0], [1], [0, 0, 1, 1], [], []>} : vector<16x32xf32>, vector<32x128xf32>, vector<16x128xf32> -> vector<16x128xf32>
    %18 = arith.addf %15, %17 : vector<16x128xf32>
    %c0_20 = arith.constant 0 : index
    %c0_21 = arith.constant 0 : index
    %19 = vector.load %arg11[%c0_20, %c0_21] : memref<16x128xf32, #tpu.memory_space<vmem>>, vector<16x128xf32>
    tpu.vector_store %arg11[%c0_20, %c0_21], %18 {strides = array<i32>} : memref<16x128xf32, #tpu.memory_space<vmem>>, vector<16x128xf32>,
    return
  }
  func.func @transform_0(%arg0: i32, %arg1: i32) -> (i32, i32) {
    %c0_i32 = arith.constant 0 : i32
    %c0_i32_0 = arith.constant 0 : i32
    return %arg1, %c0_i32 : i32, i32
  }
  func.func @transform_1(%arg0: i32, %arg1: i32) -> (i32, i32) {
    %c0_i32 = arith.constant 0 : i32
    %c0_i32_0 = arith.constant 0 : i32
    return %arg1, %c0_i32 : i32, i32
  }
  func.func @transform_2(%arg0: i32, %arg1: i32) -> (i32, i32) {
    %c0_i32 = arith.constant 0 : i32
    %c0_i32_0 = arith.constant 0 : i32
    return %c0_i32, %arg0 : i32, i32
  }
  func.func @transform_3(%arg0: i32, %arg1: i32) -> (i32, i32) {
    %c0_i32 = arith.constant 0 : i32
    %c0_i32_0 = arith.constant 0 : i32
    return %c0_i32, %arg0 : i32, i32
  }
  func.func @transform_4(%arg0: i32, %arg1: i32) -> (i32, i32) {
    %c0_i32 = arith.constant 0 : i32
    %c0_i32_0 = arith.constant 0 : i32
    return %c0_i32, %arg0 : i32, i32
  }
  func.func @transform_5(%arg0: i32, %arg1: i32) -> (i32, i32) {
    %c0_i32 = arith.constant 0 : i32
    %c0_i32_0 = arith.constant 0 : i32
    return %c0_i32, %arg0 : i32, i32
  }
  func.func @transform_6(%arg0: i32, %arg1: i32) -> (i32, i32) {
    %c0_i32 = arith.constant 0 : i32
    %c0_i32_0 = arith.constant 0 : i32
    return %c0_i32, %arg0 : i32, i32
  }
  func.func @transform_7(%arg0: i32, %arg1: i32) -> (i32, i32) {
    %c0_i32 = arith.constant 0 : i32
    %c0_i32_0 = arith.constant 0 : i32
    return %c0_i32, %arg0 : i32, i32
  }
  func.func @transform_8(%arg0: i32, %arg1: i32) -> (i32, i32) {
    %c0_i32 = arith.constant 0 : i32
    return %arg1, %arg0 : i32, i32
  }
  func.func @transform_9(%arg0: i32, %arg1: i32) -> (i32, i32) {
    %c0_i32 = arith.constant 0 : i32
    return %arg1, %arg0 : i32, i32
  }
}

module attributes {stable_mosaic.version = 11 : i64} {
  func.func @kernel(%arg0: i32, %arg1: i32, %arg2: memref<16x32xf32, #tpu.memory_space<vmem>>, %arg3: memref<16x32xf32, #tpu.memory_space<vmem>>, %arg4: memref<32x32xf32, #tpu.memory_space<vmem>>, %arg5: memref<32x32xf32, #tpu.memory_space<vmem>>, %arg6: memref<1x32xf32, #tpu.memory_space<vmem>>, %arg7: memref<16x32xf32, #tpu.memory_space<vmem>>) attributes {dimension_semantics = [#tpu.dimension_semantics<parallel>, #tpu.dimension_semantics<parallel>], iteration_bounds = array<i64: 1, 1>, scalar_prefetch = 0 : i64, scratch_operands = 0 : i64, tpu.core_type = #tpu.core_type<tc>, window_params = [{transform_indices = @transform_0, window_bounds = array<i64: 16, 32>}, {transform_indices = @transform_1, window_bounds = array<i64: 16, 32>}, {transform_indices = @transform_2, window_bounds = array<i64: 32, 32>}, {transform_indices = @transform_3, window_bounds = array<i64: 32, 32>}, {transform_indices = @transform_4, window_bounds = array<i64: 1, 32>}, {transform_indices = @transform_5, window_bounds = array<i64: 16, 32>}]} {
    %c0 = arith.constant 0 : index
    %c0_0 = arith.constant 0 : index
    %0 = vector.load %arg2[%c0, %c0_0] : memref<16x32xf32, #tpu.memory_space<vmem>>, vector<16x32xf32>
    %c0_1 = arith.constant 0 : index
    %c0_2 = arith.constant 0 : index
    %1 = vector.load %arg3[%c0_1, %c0_2] : memref<16x32xf32, #tpu.memory_space<vmem>>, vector<16x32xf32>
    %c0_3 = arith.constant 0 : index
    %c0_4 = arith.constant 0 : index
    %2 = vector.load %arg6[%c0_3, %c0_4] : memref<1x32xf32, #tpu.memory_space<vmem>>, vector<1x32xf32>
    %c0_5 = arith.constant 0 : index
    %c0_6 = arith.constant 0 : index
    %3 = vector.load %arg4[%c0_5, %c0_6] : memref<32x32xf32, #tpu.memory_space<vmem>>, vector<32x32xf32>
    %cst = arith.constant dense<0.000000e+00> : vector<16x32xf32>
    %4 = tpu.matmul %0, %3, %cst {dimension_numbers = #tpu.dot_dimension_numbers<[1], [0], [0], [1], [0, 0, 1, 1], [], []>} : vector<16x32xf32>, vector<32x32xf32>, vector<16x32xf32> -> vector<16x32xf32>
    %5 = vector.broadcast %2 : vector<1x32xf32> to vector<16x32xf32>
    %6 = arith.addf %5, %4 : vector<16x32xf32>
    %c0_7 = arith.constant 0 : index
    %c0_8 = arith.constant 0 : index
    %7 = vector.load %arg5[%c0_7, %c0_8] : memref<32x32xf32, #tpu.memory_space<vmem>>, vector<32x32xf32>
    %cst_9 = arith.constant dense<0.000000e+00> : vector<16x32xf32>
    %8 = tpu.matmul %1, %7, %cst_9 {dimension_numbers = #tpu.dot_dimension_numbers<[1], [0], [0], [1], [0, 0, 1, 1], [], []>} : vector<16x32xf32>, vector<32x32xf32>, vector<16x32xf32> -> vector<16x32xf32>
    %9 = arith.addf %6, %8 : vector<16x32xf32>
    %c0_10 = arith.constant 0 : index
    %c0_11 = arith.constant 0 : index
    %10 = vector.load %arg7[%c0_10, %c0_11] : memref<16x32xf32, #tpu.memory_space<vmem>>, vector<16x32xf32>
    tpu.vector_store %arg7[%c0_10, %c0_11], %9 {strides = array<i32>} : memref<16x32xf32, #tpu.memory_space<vmem>>, vector<16x32xf32>,
    return
  }
  func.func @transform_0(%arg0: i32, %arg1: i32) -> (i32, i32) {
    %c0_i32 = arith.constant 0 : i32
    %c0_i32_0 = arith.constant 0 : i32
    return %arg1, %c0_i32 : i32, i32
  }
  func.func @transform_1(%arg0: i32, %arg1: i32) -> (i32, i32) {
    %c0_i32 = arith.constant 0 : i32
    %c0_i32_0 = arith.constant 0 : i32
    return %arg1, %c0_i32 : i32, i32
  }
  func.func @transform_2(%arg0: i32, %arg1: i32) -> (i32, i32) {
    %c0_i32 = arith.constant 0 : i32
    %c0_i32_0 = arith.constant 0 : i32
    return %c0_i32, %arg0 : i32, i32
  }
  func.func @transform_3(%arg0: i32, %arg1: i32) -> (i32, i32) {
    %c0_i32 = arith.constant 0 : i32
    %c0_i32_0 = arith.constant 0 : i32
    return %c0_i32, %arg0 : i32, i32
  }
  func.func @transform_4(%arg0: i32, %arg1: i32) -> (i32, i32) {
    %c0_i32 = arith.constant 0 : i32
    %c0_i32_0 = arith.constant 0 : i32
    return %c0_i32, %arg0 : i32, i32
  }
  func.func @transform_5(%arg0: i32, %arg1: i32) -> (i32, i32) {
    %c0_i32 = arith.constant 0 : i32
    return %arg1, %arg0 : i32, i32
  }
}

</mosaic_0001>

<bundles_post_ra>
// kernel: birnn_forward.5
= control target key start
LH: loop header
LB: loop body
LE: loop exit
PB: predicated region body
PF: predicated region fallthrough
CT: control target
= control target key end

     0   :  { %vm27_vm0 = vcmask 130048   ;;  %s326_s1 = inlined_call_operand.vmem [shape: f32[16,128], index: 1, kind: input, shape index: {}]   ;;  %s327_s2 = inlined_call_operand.vmem [shape: f32[16,128], index: 2, kind: input, shape index: {}]   ;;  %s328_s0 = inlined_call_operand.vmem [shape: f32[16,16], index: 0, kind: input, shape index: {}]   ;;  %s329_s3 = inlined_call_operand.vmem [shape: f32[1,128], index: 3, kind: input, shape index: {}]   ;;  %s330_s4 = inlined_call_operand.vmem [shape: f32[1,128], index: 4, kind: input, shape index: {}]   ;;  %s331_s5 = inlined_call_operand.vmem [shape: f32[16,128], index: 5, kind: output, shape index: {0}]   ;;  %s332_s6 = inlined_call_operand.vmem [shape: f32[16,128], index: 6, kind: output, shape index: {1}]  }
   0x1   :  { %v25_v0 = vld [vmem:[%s326_s1] sm:$0xff]  ;;  %v26_v1 = vld [vmem:[%s326_s1 + $0x8] sm:$0xff] }
   0x2   :  { %v120_v2 = vld [vmem:[%s327_s2] sm:$0xff]  ;;  %v243_v3 = vpack.c.bf16 %v26_v1, %v25_v0  ;;  %v121_v4 = vld [vmem:[%s327_s2 + $0x8] sm:$0xff] }
   0x3   :  { %v22_v5 = vld [vmem:[%s328_s0] sm:$0xff]  ;;  %v247_v6 = vpack.c.bf16 %v121_v4, %v120_v2  ;;  %v23_v7 = vld [vmem:[%s328_s0 + $0x8] sm:$0xff] }
   0x4   :  { %233 = vmatprep.mubr.msk.f32.mxu0 %vm27_vm0, %v22_v5  ;;  %240 = vmatprep.mubr.msk.f32.mxu1 %vm27_vm0, %v22_v5  ;;  %v217_v8 = vld [vmem:[%s329_s3] ss:$0 sm:$0xff] }
   0x5   :  { %244 = vmatprep.subr.bf16.mxu0 %v243_v3  ;;  %248 = vmatprep.subr.bf16.mxu1 %v247_v6  ;;  %v220_v9 = vld [vmem:[%s330_s4] ss:$0 sm:$0xff] }
   0x6   :  { %246 = vmatpush3.bf16.msra.mxu0 %v243_v3  ;;  %250 = vmatpush3.bf16.msra.mxu1 %v247_v6 }
   0x9   :  { %234 = vmatmul.mubr.msk.f32.vlgmr.msra.gmra.mrb[0].mxu0 %vm27_vm0, %v23_v7  ;;  %241 = vmatmul.mubr.msk.f32.vlgmr.msra.gmra.mrb[0].mxu1 %vm27_vm0, %v23_v7 }
  0xdc   :  { %v235_v10 = vpop.f32.mrb[0].mxu0  ;;  %v242_v12 = vpop.f32.mrb[0].mxu1 }
  0xdd   :  { %v116_v11 = vadd.f32 %v235_v10, %v217_v8  ;;  %v100_v13 = vpop.f32.mrb[1].mxu0  ;;  %v204_v14 = vadd.f32 %v242_v12, %v220_v9  ;;  %v188_v16 = vpop.f32.mrb[1].mxu1 }
  0xde   :  { %v115_v15 = vadd.f32 %v217_v8, %v100_v13  ;;  %v203_v17 = vadd.f32 %v220_v9, %v188_v16 }
  0xdf   :  { %118 = vst [vmem:[%s331_s5 + $0x8] sm:$0xff] %v116_v11  ;;  %206 = vst [vmem:[%s332_s6 + $0x8] sm:$0xff] %v204_v14 }
  0xe0   :  { %117 = vst [vmem:[%s331_s5] sm:$0xff] %v115_v15  ;;  %205 = vst [vmem:[%s332_s6] sm:$0xff] %v203_v17 }

// kernel: birnn_forward.7
= control target key start
LH: loop header
LB: loop body
LE: loop exit
PB: predicated region body
PF: predicated region fallthrough
CT: control target
= control target key end

     0   :  { %vm40_vm0 = vcmask 261120   ;;  %s652_s2 = inlined_call_operand.vmem [shape: f32[32,128], index: 2, kind: input, shape index: {}]   ;;  %s653_s3 = inlined_call_operand.vmem [shape: f32[32,128], index: 3, kind: input, shape index: {}]   ;;  %s654_s0 = inlined_call_operand.vmem [shape: f32[16,32], index: 0, kind: input, shape index: {}]   ;;  %s655_s4 = inlined_call_operand.vmem [shape: f32[32,128], index: 4, kind: input, shape index: {}]   ;;  %s656_s5 = inlined_call_operand.vmem [shape: f32[32,128], index: 5, kind: input, shape index: {}]   ;;  %s657_s1 = inlined_call_operand.vmem [shape: f32[16,32], index: 1, kind: input, shape index: {}]   ;;  %s658_s6 = inlined_call_operand.vmem [shape: f32[1,128], index: 6, kind: input, shape index: {}]   ;;  %s659_s7 = inlined_call_operand.vmem [shape: f32[1,128], index: 7, kind: input, shape index: {}]   ;;  %s660_s8 = inlined_call_operand.vmem [shape: f32[16,128], index: 8, kind: output, shape index: {0}]   ;;  %s661_s9 = inlined_call_operand.vmem [shape: f32[16,128], index: 9, kind: output, shape index: {1}]  }
   0x1   :  { %v36_v0 = vld [vmem:[%s652_s2] sm:$0xff]  ;;  %v37_v1 = vld [vmem:[%s652_s2 + $0x8] sm:$0xff]  ;;  %v38_v5 = vld [vmem:[%s652_s2 + $0x10] sm:$0xff] }
   0x2   :  { %v220_v2 = vld [vmem:[%s653_s3] sm:$0xff]  ;;  %v476_v3 = vpack.c.bf16 %v37_v1, %v36_v0  ;;  %v221_v4 = vld [vmem:[%s653_s3 + $0x8] sm:$0xff]  ;;  %v39_v6 = vld [vmem:[%s652_s2 + $0x18] sm:$0xff] }
   0x3   :  { %v492_v7 = vpack.c.bf16 %v221_v4, %v220_v2  ;;  %v480_v8 = vpack.c.bf16 %v39_v6, %v38_v5  ;;  %v222_v9 = vld [vmem:[%s653_s3 + $0x10] sm:$0xff]  ;;  %v223_v10 = vld [vmem:[%s653_s3 + $0x18] sm:$0xff]  ;;  %v31_v11 = vld [vmem:[%s654_s0] sm:$0xff] }
   0x4   :  { %477 = vmatprep.subr.bf16.mxu0 %v476_v3  ;;  %v496_v12 = vpack.c.bf16 %v223_v10, %v222_v9  ;;  %440 = vmatprep.mubr.msk.f32.mxu0 %vm40_vm0, %v31_v11  ;;  %v130_v13 = vld [vmem:[%s655_s4] sm:$0xff]  ;;  %v131_v14 = vld [vmem:[%s655_s4 + $0x8] sm:$0xff]  ;;  %v132_v19 = vld [vmem:[%s655_s4 + $0x10] sm:$0xff] }
   0x5   :  { %493 = vmatprep.subr.bf16.mxu1 %v492_v7  ;;  %479 = vmatpush3.bf16.msra.mxu0 %v476_v3  ;;  %v307_v15 = vld [vmem:[%s656_s5] sm:$0xff]  ;;  %v308_v16 = vld [vmem:[%s656_s5 + $0x8] sm:$0xff]  ;;  %v484_v17 = vpack.c.bf16 %v131_v14, %v130_v13  ;;  %v133_v20 = vld [vmem:[%s655_s4 + $0x18] sm:$0xff] }
   0x6   :  { %495 = vmatpush3.bf16.msra.mxu1 %v492_v7  ;;  %481 = vmatprep.subr.bf16.mxu0 %v480_v8  ;;  %v500_v18 = vpack.c.bf16 %v308_v16, %v307_v15  ;;  %v309_v21 = vld [vmem:[%s656_s5 + $0x10] sm:$0xff]  ;;  %v310_v22 = vld [vmem:[%s656_s5 + $0x18] sm:$0xff]  ;;  %v32_v23 = vld [vmem:[%s654_s0 + $0x8] sm:$0xff]  ;;  %v488_v24 = vpack.c.bf16 %v133_v20, %v132_v19 }
   0x7   :  { %497 = vmatprep.subr.bf16.mxu1 %v496_v12  ;;  %462 = vmatprep.mubr.msk.f32.mxu1 %vm40_vm0, %v31_v11  ;;  %v504_v25 = vpack.c.bf16 %v310_v22, %v309_v21  ;;  %v33_v26 = vld [vmem:[%s657_s1] sm:$0xff]  ;;  %v34_v27 = vld [vmem:[%s657_s1 + $0x8] sm:$0xff] }
   0x8   :  { %v400_v28 = vld [vmem:[%s658_s6] ss:$0 sm:$0xff] }
   0x9   :  { %483 = vmatpush3.bf16.msra.mxu0 %v480_v8  ;;  %v405_v29 = vld [vmem:[%s659_s7] ss:$0 sm:$0xff] }
   0xa   :  { %499 = vmatpush3.bf16.msra.mxu1 %v496_v12  ;;  %485 = vmatprep.subr.bf16.mxu0 %v484_v17 }
   0xb   :  { %501 = vmatprep.subr.bf16.mxu1 %v500_v18 }
   0xc   :  { %441 = vmatmul.mubr.msk.f32.vlgmr.msra.gmra.mrb[0].mxu0 %vm40_vm0, %v32_v23 }
   0xd   :  { %463 = vmatmul.mubr.msk.f32.vlgmr.msra.gmra.mrb[0].mxu1 %vm40_vm0, %v32_v23  ;;  %487 = vmatpush3.bf16.msra.mxu0 %v484_v17 }
   0xe   :  { %503 = vmatpush3.bf16.msra.mxu1 %v500_v18  ;;  %489 = vmatprep.subr.bf16.mxu0 %v488_v24 }
   0xf   :  { %505 = vmatprep.subr.bf16.mxu1 %v504_v25  ;;  %451 = vmatprep.mubr.msk.f32.mxu0 %vm40_vm0, %v33_v26 }
  0x10   :  { %473 = vmatprep.mubr.msk.f32.mxu1 %vm40_vm0, %v33_v26 }
  0x11   :  { %491 = vmatpush3.bf16.msra.mxu0 %v488_v24 }
  0x12   :  { %507 = vmatpush3.bf16.msra.mxu1 %v504_v25 }
  0x14   :  { %452 = vmatmul.mubr.msk.f32.vlgmr.msra.gmra.mrb[0].mxu0 %vm40_vm0, %v34_v27 }
  0x15   :  { %474 = vmatmul.mubr.msk.f32.vlgmr.msra.gmra.mrb[0].mxu1 %vm40_vm0, %v34_v27 }
  0xe7   :  { %v453_v30 = vpop.f32.mrb[0].mxu0 }
  0xe8   :  { %v508_v31 = vadd.f32 %v453_v30, %v400_v28  ;;  %v475_v32 = vpop.f32.mrb[0].mxu1  ;;  %v206_v33 = vpop.f32.mrb[1].mxu0 }
  0xe9   :  { %v510_v34 = vadd.f32 %v475_v32, %v405_v29  ;;  %v509_v35 = vadd.f32 %v400_v28, %v206_v33  ;;  %v377_v36 = vpop.f32.mrb[1].mxu1 }
  0xea   :  { %218 = vst [vmem:[%s660_s8 + $0x8] sm:$0xff] %v508_v31  ;;  %v511_v37 = vadd.f32 %v405_v29, %v377_v36 }
  0xeb   :  { %389 = vst [vmem:[%s661_s9 + $0x8] sm:$0xff] %v510_v34  ;;  %217 = vst [vmem:[%s660_s8] sm:$0xff] %v509_v35 }
  0xec   :  { %388 = vst [vmem:[%s661_s9] sm:$0xff] %v511_v37 }

// kernel: birnn_forward.9
= control target key start
LH: loop header
LB: loop body
LE: loop exit
PB: predicated region body
PF: predicated region fallthrough
CT: control target
= control target key end

     0   :  { %vm29_vm0 = vcmask 261120   ;;  %s352_s2 = inlined_call_operand.vmem [shape: f32[32,32], index: 2, kind: input, shape index: {}]   ;;  %s353_s3 = inlined_call_operand.vmem [shape: f32[32,32], index: 3, kind: input, shape index: {}]   ;;  %s354_s0 = inlined_call_operand.vmem [shape: f32[16,32], index: 0, kind: input, shape index: {}]   ;;  %s355_s1 = inlined_call_operand.vmem [shape: f32[16,32], index: 1, kind: input, shape index: {}]   ;;  %s356_s4 = inlined_call_operand.vmem [shape: f32[1,32], index: 4, kind: input, shape index: {}]   ;;  %s357_s5 = inlined_call_operand.vmem [shape: f32[16,32], index: 5, kind: output, shape index: {}]  }
   0x1   :  { %v25_v0 = vld [vmem:[%s352_s2] sm:$0xff]  ;;  %v26_v1 = vld [vmem:[%s352_s2 + $0x8] sm:$0xff]  ;;  %v27_v5 = vld [vmem:[%s352_s2 + $0x10] sm:$0xff] }
   0x2   :  { %v119_v2 = vld [vmem:[%s353_s3] sm:$0xff]  ;;  %v251_v3 = vpack.c.bf16 %v26_v1, %v25_v0  ;;  %v120_v4 = vld [vmem:[%s353_s3 + $0x8] sm:$0xff]  ;;  %v28_v6 = vld [vmem:[%s352_s2 + $0x18] sm:$0xff] }
   0x3   :  { %v259_v7 = vpack.c.bf16 %v120_v4, %v119_v2  ;;  %v255_v8 = vpack.c.bf16 %v28_v6, %v27_v5  ;;  %v121_v9 = vld [vmem:[%s353_s3 + $0x10] sm:$0xff]  ;;  %v122_v10 = vld [vmem:[%s353_s3 + $0x18] sm:$0xff]  ;;  %v20_v11 = vld [vmem:[%s354_s0] sm:$0xff] }
   0x4   :  { %252 = vmatprep.subr.bf16.mxu1 %v251_v3  ;;  %v263_v12 = vpack.c.bf16 %v122_v10, %v121_v9  ;;  %237 = vmatprep.mubr.msk.f32.mxu1 %vm29_vm0, %v20_v11  ;;  %v22_v13 = vld [vmem:[%s355_s1] sm:$0xff]  ;;  %v21_v14 = vld [vmem:[%s354_s0 + $0x8] sm:$0xff] }
   0x5   :  { %254 = vmatpush3.bf16.msra.mxu1 %v251_v3  ;;  %260 = vmatprep.subr.bf16.mxu0 %v259_v7  ;;  %v23_v15 = vld [vmem:[%s355_s1 + $0x8] sm:$0xff]  ;;  %v214_v16 = vld [vmem:[%s356_s4] ss:$0 sm:$0xff] }
   0x6   :  { %262 = vmatpush3.bf16.msra.mxu0 %v259_v7  ;;  %256 = vmatprep.subr.bf16.mxu1 %v255_v8 }
   0x7   :  { %264 = vmatprep.subr.bf16.mxu0 %v263_v12  ;;  %248 = vmatprep.mubr.msk.f32.mxu0 %vm29_vm0, %v22_v13 }
   0x9   :  { %258 = vmatpush3.bf16.msra.mxu1 %v255_v8 }
   0xa   :  { %266 = vmatpush3.bf16.msra.mxu0 %v263_v12 }
   0xc   :  { %238 = vmatmul.mubr.msk.f32.vlgmr.msra.gmra.mrb[0].mxu1 %vm29_vm0, %v21_v14 }
   0xd   :  { %249 = vmatmul.mubr.msk.f32.vlgmr.msra.gmra.mrb[0].mxu0 %vm29_vm0, %v23_v15 }
  0xdf   :  { %v239_v17 = vpop.f32.mrb[0].mxu1 }
  0xe0   :  { %v118_v18 = vadd.f32 %v239_v17, %v214_v16  ;;  %v102_v19 = vpop.f32.mrb[1].mxu1  ;;  %v250_v20 = vpop.f32.mrb[0].mxu0 }
  0xe1   :  { %v117_v21 = vadd.f32 %v214_v16, %v102_v19  ;;  %v195_v22 = vpop.f32.mrb[1].mxu0 }
  0xe2   :  { %v205_v23 = vadd.f32 %v250_v20, %v118_v18 }
  0xe3   :  { %v204_v24 = vadd.f32 %v195_v22, %v117_v21 }
  0xe4   :  { %207 = vst.msk [vmem:[%s357_s5 + $0x8] sm:$0xff] %vm29_vm0, %v205_v23 }
  0xe5   :  { %206 = vst.msk [vmem:[%s357_s5] sm:$0xff] %vm29_vm0, %v204_v24 }

// kernel: birnn_forward.6
= control target key start
LH: loop header
LB: loop body
LE: loop exit
PB: predicated region body
PF: predicated region fallthrough
CT: control target
= control target key end

     0   :  { %vm59_vm0 = vcmask 254976   ;;  %v2414_v0 = vmov 0.0|0.0   ;;  %v2415_v4 = vmov 0.0   ;;  %vm2416_vm1 = vmmov 0   ;;  %s2418_s12 = smov 64   ;;  %s2824_s2 = inlined_call_operand.vmem [shape: f32[32,128], index: 2, kind: input, shape index: {}]   ;;  %s2825_s3 = inlined_call_operand.vmem [shape: f32[32,128], index: 3, kind: input, shape index: {}]   ;;  %s2826_s0 = inlined_call_operand.vmem [shape: f32[8,2,128], index: 0, kind: input, shape index: {}]   ;;  %s2827_s1 = inlined_call_operand.vmem [shape: f32[8,2,128], index: 1, kind: input, shape index: {}]   ;;  %s2828_s4 = inlined_call_operand.vmem [shape: f32[8,2,32], index: 4, kind: output, shape index: {0}]   ;;  %s2829_s5 = inlined_call_operand.vmem [shape: f32[8,2,32], index: 5, kind: output, shape index: {1}]  }
   0x1   :  { %2184 = vmatprep.subr.bf16.mxu0 %v2414_v0  ;;  %v69_v1 = vld [vmem:[%s2824_s2] sm:$0xff]  ;;  %v70_v2 = vld [vmem:[%s2824_s2 + $0x8] sm:$0xff]  ;;  %2190 = vmatprep.subr.bf16.mxu1 %v2414_v0  ;;  %60 = vst.msk [vmem:[#allocation2] sm:$0x3] %vm59_vm0, %v2415_v4  ;;  %61 = vst.msk [vmem:[#allocation3] sm:$0x3] %vm59_vm0, %v2415_v4 }
   0x2   :  { %v184_v3 = vld [vmem:[%s2825_s3] sm:$0xff]  ;;  %62 = vst.msk [vmem:[#allocation4] sm:$0x3] %vm59_vm0, %v2415_v4  ;;  %63 = vst.msk [vmem:[#allocation5] sm:$0x3] %vm59_vm0, %v2415_v4  ;;  %v2469_v5 = vpack.c.bf16 %v70_v2, %v69_v1  ;;  %v185_v6 = vld [vmem:[%s2825_s3 + $0x8] sm:$0xff]  ;;  %2016 = vmatprep.mubr.msk.f32.mxu0 %vm2416_vm1, %v2415_v4  ;;  %2027 = vmatprep.mubr.msk.f32.mxu1 %vm2416_vm1, %v2415_v4 }
   0x3   :  { %v71_v7 = vld [vmem:[%s2824_s2 + $0x10] sm:$0xff]  ;;  %v72_v8 = vld [vmem:[%s2824_s2 + $0x18] sm:$0xff]  ;;  %v2484_v9 = vpack.c.bf16 %v185_v6, %v184_v3  ;;  %vm73_vm2 = vcmask 261120   ;;  %s2417_s2 = smov 32   ;;  %v68_v18 = vld [vmem:[%s2826_s0] sm:$0x3] }
   0x4   :  { %v186_v10 = vld [vmem:[%s2825_s3 + $0x10] sm:$0xff]  ;;  %v187_v11 = vld [vmem:[%s2825_s3 + $0x18] sm:$0xff]  ;;  %2186 = vmatpush3.bf16.msra.mxu0 %v2469_v5  ;;  %v2493_v12 = vpack.c.bf16 %v72_v8, %v71_v7  ;;  %v1870_v19 = vld [vmem:[%s2827_s1 + $0xe] sm:$0x3] }
   0x5   :  { %2187 = vmatprep.subr.bf16.mxu0 %v2414_v0  ;;  %2192 = vmatpush3.bf16.msra.mxu1 %v2484_v9  ;;  %v2497_v13 = vpack.c.bf16 %v187_v11, %v186_v10  ;;  %v1874_v56 = vld [vmem:[%s2826_s0 + $0x2] sm:$0x3]  ;;  %v1878_v60 = vld [vmem:[%s2827_s1 + $0xc] sm:$0x3] }
   0x6   :  { %2193 = vmatprep.subr.bf16.mxu1 %v2414_v0 }
   0x8   :  { %2189 = vmatpush3.bf16.msra.mxu0 %v2493_v12  ;;  %v64_v14 = vld [vmem:[#allocation2] sm:$0x3]  ;;  %v65_v15 = vld [vmem:[#allocation3] sm:$0x3] }
   0x9   :  { %2195 = vmatpush3.bf16.msra.mxu1 %v2497_v13  ;;  %v66_v16 = vld [vmem:[#allocation4] sm:$0x3]  ;;  %156 = vrot.lane.b32.xlu1 %v65_v15, %s2417_s2  ;;  %v67_v17 = vld [vmem:[#allocation5] sm:$0x3] }
   0xa   :  { %2196 = vmatprep.subr.bf16.mxu0 %v2414_v0  ;;  %2202 = vmatprep.subr.bf16.mxu1 %v2414_v0 }
   0xb   :  { %2017 = vmatmul.mubr.msk.f32.vlgmr.msra.gmra.mrb[0].mxu0 %vm73_vm2, %v64_v14 }
   0xc   :  { %2028 = vmatmul.mubr.msk.f32.vlgmr.msra.gmra.mrb[0].mxu1 %vm73_vm2, %v66_v16  ;;  %2198 = vmatpush3.bf16.msra.mxu0 %v2469_v5 }
   0xd   :  { %270 = vrot.lane.b32.xlu1 %v67_v17, %s2417_s2  ;;  %2199 = vmatprep.subr.bf16.mxu0 %v2414_v0 }
   0xe   :  { %2204 = vmatpush3.bf16.msra.mxu1 %v2484_v9  ;;  %2038 = vmatprep.mubr.msk.f32.mxu0 %vm2416_vm1, %v2415_v4 }
   0xf   :  { %2205 = vmatprep.subr.bf16.mxu1 %v2414_v0  ;;  %2049 = vmatprep.mubr.msk.f32.mxu1 %vm2416_vm1, %v2415_v4 }
  0x10   :  { %2201 = vmatpush3.bf16.msra.mxu0 %v2493_v12 }
  0x11   :  { %2208 = vmatprep.subr.bf16.mxu0 %v2414_v0 }
  0x12   :  { %2207 = vmatpush3.bf16.msra.mxu1 %v2497_v13 }
  0x13   :  { %2214 = vmatprep.subr.bf16.mxu1 %v2414_v0 }
  0x7b   :  { %v157_v40 = vpop.permute.xlu1 %156 }
  0x7f   :  { %v271_v42 = vpop.permute.xlu1 %270 }
  0xde   :  { %v143_v20 = vpop.f32.mrb[0].mxu0 }
  0xdf   :  { %v147_v21 = vadd.f32 %v143_v20, %v68_v18  ;;  %v2018_v22 = vpop.f32.mrb[1].mxu0  ;;  %v257_v23 = vpop.f32.mrb[0].mxu1 }
  0xe0   :  { %v261_v24 = vadd.f32 %v1870_v19, %v257_v23  ;;  %v2029_v25 = vpop.f32.mrb[1].mxu1 }
  0xe1   :  { %2286 = vtanh.f32 %v147_v21  ;;  %v1869_v28 = vmul.f32 -1.442695, %v147_v21 }
  0xe2   :  { %2288 = vtanh.f32 %v261_v24  ;;  %v1872_v29 = vmul.f32 -1.442695, %v261_v24 }
  0xe3   :  { %2290 = vpow2.f32 %v1869_v28 }
  0xe4   :  { %2292 = vpow2.f32 %v1872_v29 }
  0xeb   :  { %v2287_v26 = vpop.eup %2286 }
  0xec   :  { %161 = vrot.lane.b32.xlu0 %v2287_v26, %s2418_s12  ;;  %v2289_v27 = vpop.eup %2288 }
  0xed   :  { %v2291_v30 = vpop.eup %2290 }
  0xee   :  { %v151_v31 = vadd.f32 1.0, %v2291_v30  ;;  %v2293_v32 = vpop.eup %2292 }
  0xef   :  { %v265_v33 = vadd.f32 1.0, %v2293_v32 }
  0xf0   :  { %275 = vrot.lane.b32.xlu0 %v2289_v27, %s2418_s12  ;;  %2294 = vrcp.f32 %v151_v31 }
  0xf1   :  { %2296 = vrcp.f32 %v265_v33 }
  0xfa   :  { %v2295_v34 = vpop.eup %2294 }
  0xfb   :  { %v2297_v37 = vpop.eup %2296  ;;  %v159_v41 = vmul.f32 %v2295_v34, %v157_v40 }
  0xfc   :  { %v273_v45 = vmul.f32 %v2297_v37, %v271_v42 }
 0x15e   :  { %v162_v35 = vpop.permute.xlu0 %161 }
 0x15f   :  { %v164_v36 = vmul.f32 %v2295_v34, %v162_v35 }
 0x161   :  { %166 = vrot.lane.b32.xlu0 %v164_v36, %s2417_s2 }
 0x162   :  { %v276_v38 = vpop.permute.xlu0 %275 }
 0x163   :  { %v278_v39 = vmul.f32 %v2297_v37, %v276_v38  ;;  %v1886_v38 = vld [vmem:[%s2827_s1 + $0xa] sm:$0x3] }
 0x165   :  { %280 = vrot.lane.b32.xlu1 %v278_v39, %s2417_s2 }
 0x1d3   :  { %v167_v43 = vpop.permute.xlu0 %166 }
 0x1d4   :  { %v2530_v44 = vadd.f32 %v167_v43, %v159_v41 }
 0x1d6   :  { %2298 = vtanh.f32 %v2530_v44 }
 0x1d7   :  { %v281_v46 = vpop.permute.xlu1 %280 }
 0x1d8   :  { %v2533_v47 = vadd.f32 %v281_v46, %v273_v45 }
 0x1da   :  { %2300 = vtanh.f32 %v2533_v47 }
 0x1e0   :  { %v2299_v48 = vpop.eup %2298 }
 0x1e1   :  { %172 = vrot.lane.b32.xlu0 %v2299_v48, %s2418_s12 }
 0x1e4   :  { %v2301_v49 = vpop.eup %2300 }
 0x1e5   :  { %286 = vrot.lane.b32.xlu1 %v2301_v49, %s2418_s12 }
 0x253   :  { %v173_v50 = vpop.permute.xlu0 %172 }
 0x254   :  { %v175_v51 = vmul.f32 %v2295_v34, %v173_v50  ;;  %v1882_v34 = vld [vmem:[%s2826_s0 + $0x4] sm:$0x3] }
 0x256   :  { %177 = vrot.lane.b32.xlu0 %v175_v51, %s2417_s2 }
 0x257   :  { %v287_v52 = vpop.permute.xlu1 %286 }
 0x258   :  { %v289_v53 = vmul.f32 %v2297_v37, %v287_v52 }
 0x25a   :  { %291 = vrot.lane.b32.xlu1 %v289_v53, %s2417_s2 }
 0x2c8   :  { %v178_v54 = vpop.permute.xlu0 %177 }
 0x2c9   :  { %181 = vst.msk [vmem:[%s2828_s4] sm:$0x3] %vm59_vm0, %v178_v54  ;;  %2039 = vmatmul.mubr.msk.f32.vlgmr.msra.gmra.mrb[2].mxu0 %vm73_vm2, %v178_v54 }
 0x2ca   :  { %2210 = vmatpush3.bf16.msra.mxu0 %v2469_v5  ;;  %2060 = vmatprep.mubr.msk.f32.mxu0 %vm2416_vm1, %v2415_v4 }
 0x2cb   :  { %2211 = vmatprep.subr.bf16.mxu0 %v2414_v0 }
 0x2cc   :  { %v292_v55 = vpop.permute.xlu1 %291 }
 0x2cd   :  { %1873 = vst.msk [vmem:[%s2829_s5 + $0xe] sm:$0x3] %vm59_vm0, %v292_v55  ;;  %2050 = vmatmul.mubr.msk.f32.vlgmr.msra.gmra.mrb[2].mxu1 %vm73_vm2, %v292_v55 }
 0x2ce   :  { %2213 = vmatpush3.bf16.msra.mxu0 %v2493_v12  ;;  %2216 = vmatpush3.bf16.msra.mxu1 %v2484_v9 }
 0x2cf   :  { %2217 = vmatprep.subr.bf16.mxu1 %v2414_v0  ;;  %2071 = vmatprep.mubr.msk.f32.mxu1 %vm2416_vm1, %v2415_v4 }
 0x2d0   :  { %2220 = vmatprep.subr.bf16.mxu0 %v2414_v0 }
 0x2d2   :  { %2219 = vmatpush3.bf16.msra.mxu1 %v2497_v13 }
 0x2d3   :  { %2226 = vmatprep.subr.bf16.mxu1 %v2414_v0 }
 0x39c   :  { %v370_v57 = vpop.f32.mrb[2].mxu0 }
 0x39d   :  { %v374_v58 = vadd.f32 %v1874_v56, %v370_v57  ;;  %v2040_v59 = vpop.f32.mrb[3].mxu0 }
 0x39f   :  { %2302 = vtanh.f32 %v374_v58  ;;  %v1876_v3 = vmul.f32 -1.442695, %v374_v58 }
 0x3a0   :  { %v479_v61 = vpop.f32.mrb[2].mxu1 }
 0x3a1   :  { %v483_v62 = vadd.f32 %v1878_v60, %v479_v61  ;;  %v2051_v63 = vpop.f32.mrb[3].mxu1 }
 0x3a3   :  { %2304 = vtanh.f32 %v483_v62  ;;  %v1880_v6 = vmul.f32 -1.442695, %v483_v62 }
 0x3a4   :  { %2306 = vpow2.f32 %v1876_v3 }
 0x3a5   :  { %2308 = vpow2.f32 %v1880_v6 }
 0x3a9   :  { %v2303_v1 = vpop.eup %2302 }
 0x3aa   :  { %384 = vrot.lane.b32.xlu0 %v2303_v1, %s2418_s12 }
 0x3ad   :  { %v2305_v2 = vpop.eup %2304 }
 0x3ae   :  { %493 = vrot.lane.b32.xlu1 %v2305_v2, %s2418_s12  ;;  %v2307_v7 = vpop.eup %2306 }
 0x3af   :  { %v378_v8 = vadd.f32 1.0, %v2307_v7  ;;  %v2309_v10 = vpop.eup %2308 }
 0x3b0   :  { %v487_v11 = vadd.f32 1.0, %v2309_v10  ;;  %v1890_v10 = vld [vmem:[%s2826_s0 + $0x6] sm:$0x3] }
 0x3b1   :  { %2310 = vrcp.f32 %v378_v8 }
 0x3b2   :  { %2312 = vrcp.f32 %v487_v11 }
 0x3bb   :  { %v2311_v14 = vpop.eup %2310 }
 0x3bc   :  { %v2313_v17 = vpop.eup %2312  ;;  %v382_v20 = vmul.f32 %v2311_v14, %v2530_v44 }
 0x3bd   :  { %v491_v23 = vmul.f32 %v2313_v17, %v2533_v47 }
 0x41c   :  { %v385_v15 = vpop.permute.xlu0 %384 }
 0x41d   :  { %v387_v16 = vmul.f32 %v2311_v14, %v385_v15 }
 0x41f   :  { %389 = vrot.lane.b32.xlu0 %v387_v16, %s2417_s2  ;;  %v1894_v16 = vld [vmem:[%s2827_s1 + $0x8] sm:$0x3] }
 0x420   :  { %v494_v18 = vpop.permute.xlu1 %493 }
 0x421   :  { %v496_v19 = vmul.f32 %v2313_v17, %v494_v18 }
 0x423   :  { %498 = vrot.lane.b32.xlu1 %v496_v19, %s2417_s2 }
 0x491   :  { %v390_v21 = vpop.permute.xlu0 %389 }
 0x492   :  { %v2573_v22 = vadd.f32 %v390_v21, %v382_v20 }
 0x494   :  { %2314 = vtanh.f32 %v2573_v22 }
 0x495   :  { %v499_v24 = vpop.permute.xlu1 %498 }
 0x496   :  { %v2577_v25 = vadd.f32 %v499_v24, %v491_v23 }
 0x498   :  { %2316 = vtanh.f32 %v2577_v25 }
 0x49e   :  { %v2315_v26 = vpop.eup %2314 }
 0x49f   :  { %395 = vrot.lane.b32.xlu0 %v2315_v26, %s2418_s12 }
 0x4a2   :  { %v2317_v27 = vpop.eup %2316 }
 0x4a3   :  { %504 = vrot.lane.b32.xlu1 %v2317_v27, %s2418_s12 }
 0x511   :  { %v396_v28 = vpop.permute.xlu0 %395 }
 0x512   :  { %v398_v29 = vmul.f32 %v2311_v14, %v396_v28 }
 0x514   :  { %400 = vrot.lane.b32.xlu0 %v398_v29, %s2417_s2 }
 0x515   :  { %v505_v30 = vpop.permute.xlu1 %504 }
 0x516   :  { %v507_v31 = vmul.f32 %v2313_v17, %v505_v30 }
 0x518   :  { %509 = vrot.lane.b32.xlu1 %v507_v31, %s2417_s2 }
 0x586   :  { %v401_v32 = vpop.permute.xlu0 %400 }
 0x587   :  { %1877 = vst.msk [vmem:[%s2828_s4 + $0x2] sm:$0x3] %vm59_vm0, %v401_v32  ;;  %2061 = vmatmul.mubr.msk.f32.vlgmr.msra.gmra.mrb[4].mxu0 %vm73_vm2, %v401_v32 }
 0x588   :  { %2222 = vmatpush3.bf16.msra.mxu0 %v2469_v5  ;;  %2082 = vmatprep.mubr.msk.f32.mxu0 %vm2416_vm1, %v2415_v4 }
 0x589   :  { %2223 = vmatprep.subr.bf16.mxu0 %v2414_v0 }
 0x58a   :  { %v510_v33 = vpop.permute.xlu1 %509 }
 0x58b   :  { %1881 = vst.msk [vmem:[%s2829_s5 + $0xc] sm:$0x3] %vm59_vm0, %v510_v33  ;;  %2072 = vmatmul.mubr.msk.f32.vlgmr.msra.gmra.mrb[4].mxu1 %vm73_vm2, %v510_v33 }
 0x58c   :  { %2225 = vmatpush3.bf16.msra.mxu0 %v2493_v12  ;;  %2228 = vmatpush3.bf16.msra.mxu1 %v2484_v9 }
 0x58d   :  { %2229 = vmatprep.subr.bf16.mxu1 %v2414_v0  ;;  %2093 = vmatprep.mubr.msk.f32.mxu1 %vm2416_vm1, %v2415_v4 }
 0x58e   :  { %2232 = vmatprep.subr.bf16.mxu0 %v2414_v0 }
 0x590   :  { %2231 = vmatpush3.bf16.msra.mxu1 %v2497_v13 }
 0x591   :  { %2238 = vmatprep.subr.bf16.mxu1 %v2414_v0 }
 0x65a   :  { %v588_v35 = vpop.f32.mrb[4].mxu0 }
 0x65b   :  { %v592_v36 = vadd.f32 %v1882_v34, %v588_v35  ;;  %v2062_v37 = vpop.f32.mrb[5].mxu0 }
 0x65d   :  { %2318 = vtanh.f32 %v592_v36  ;;  %v1884_v44 = vmul.f32 -1.442695, %v592_v36 }
 0x65e   :  { %v697_v39 = vpop.f32.mrb[4].mxu1 }
 0x65f   :  { %v701_v40 = vadd.f32 %v1886_v38, %v697_v39  ;;  %v2073_v41 = vpop.f32.mrb[5].mxu1 }
 0x661   :  { %2320 = vtanh.f32 %v701_v40  ;;  %v1888_v45 = vmul.f32 -1.442695, %v701_v40 }
 0x662   :  { %2322 = vpow2.f32 %v1884_v44 }
 0x663   :  { %2324 = vpow2.f32 %v1888_v45 }
 0x667   :  { %v2319_v42 = vpop.eup %2318 }
 0x668   :  { %602 = vrot.lane.b32.xlu0 %v2319_v42, %s2418_s12 }
 0x66b   :  { %v2321_v43 = vpop.eup %2320 }
 0x66c   :  { %711 = vrot.lane.b32.xlu1 %v2321_v43, %s2418_s12  ;;  %v2323_v46 = vpop.eup %2322 }
 0x66d   :  { %v596_v47 = vadd.f32 1.0, %v2323_v46  ;;  %v2325_v48 = vpop.eup %2324 }
 0x66e   :  { %v705_v49 = vadd.f32 1.0, %v2325_v48  ;;  %v1898_v48 = vld [vmem:[%s2826_s0 + $0x8] sm:$0x3] }
 0x66f   :  { %2326 = vrcp.f32 %v596_v47 }
 0x670   :  { %2328 = vrcp.f32 %v705_v49 }
 0x679   :  { %v2327_v50 = vpop.eup %2326 }
 0x67a   :  { %v2329_v53 = vpop.eup %2328  ;;  %v600_v56 = vmul.f32 %v2327_v50, %v2573_v22 }
 0x67b   :  { %v709_v59 = vmul.f32 %v2329_v53, %v2577_v25 }
 0x6da   :  { %v603_v51 = vpop.permute.xlu0 %602 }
 0x6db   :  { %v605_v52 = vmul.f32 %v2327_v50, %v603_v51 }
 0x6dd   :  { %607 = vrot.lane.b32.xlu0 %v605_v52, %s2417_s2  ;;  %v1902_v52 = vld [vmem:[%s2827_s1 + $0x6] sm:$0x3] }
 0x6de   :  { %v712_v54 = vpop.permute.xlu1 %711 }
 0x6df   :  { %v714_v55 = vmul.f32 %v2329_v53, %v712_v54 }
 0x6e1   :  { %716 = vrot.lane.b32.xlu1 %v714_v55, %s2417_s2 }
 0x74f   :  { %v608_v57 = vpop.permute.xlu0 %607 }
 0x750   :  { %v2617_v58 = vadd.f32 %v608_v57, %v600_v56 }
 0x752   :  { %2330 = vtanh.f32 %v2617_v58 }
 0x753   :  { %v717_v60 = vpop.permute.xlu1 %716 }
 0x754   :  { %v2621_v61 = vadd.f32 %v717_v60, %v709_v59 }
 0x756   :  { %2332 = vtanh.f32 %v2621_v61 }
 0x75c   :  { %v2331_v62 = vpop.eup %2330 }
 0x75d   :  { %613 = vrot.lane.b32.xlu0 %v2331_v62, %s2418_s12 }
 0x760   :  { %v2333_v63 = vpop.eup %2332 }
 0x761   :  { %722 = vrot.lane.b32.xlu1 %v2333_v63, %s2418_s12 }
 0x7cf   :  { %v614_v1 = vpop.permute.xlu0 %613 }
 0x7d0   :  { %v616_v2 = vmul.f32 %v2327_v50, %v614_v1 }
 0x7d2   :  { %618 = vrot.lane.b32.xlu0 %v616_v2, %s2417_s2 }
 0x7d3   :  { %v723_v3 = vpop.permute.xlu1 %722 }
 0x7d4   :  { %v725_v6 = vmul.f32 %v2329_v53, %v723_v3 }
 0x7d6   :  { %727 = vrot.lane.b32.xlu1 %v725_v6, %s2417_s2 }
 0x844   :  { %v619_v7 = vpop.permute.xlu0 %618 }
 0x845   :  { %1885 = vst.msk [vmem:[%s2828_s4 + $0x4] sm:$0x3] %vm59_vm0, %v619_v7  ;;  %2083 = vmatmul.mubr.msk.f32.vlgmr.msra.gmra.mrb[6].mxu0 %vm73_vm2, %v619_v7 }
 0x846   :  { %2234 = vmatpush3.bf16.msra.mxu0 %v2469_v5  ;;  %2104 = vmatprep.mubr.msk.f32.mxu0 %vm2416_vm1, %v2415_v4 }
 0x847   :  { %2235 = vmatprep.subr.bf16.mxu0 %v2414_v0 }
 0x848   :  { %v728_v8 = vpop.permute.xlu1 %727 }
 0x849   :  { %1889 = vst.msk [vmem:[%s2829_s5 + $0xa] sm:$0x3] %vm59_vm0, %v728_v8  ;;  %2094 = vmatmul.mubr.msk.f32.vlgmr.msra.gmra.mrb[6].mxu1 %vm73_vm2, %v728_v8 }
 0x84a   :  { %2237 = vmatpush3.bf16.msra.mxu0 %v2493_v12  ;;  %2240 = vmatpush3.bf16.msra.mxu1 %v2484_v9 }
 0x84b   :  { %2241 = vmatprep.subr.bf16.mxu1 %v2414_v0  ;;  %2115 = vmatprep.mubr.msk.f32.mxu1 %vm2416_vm1, %v2415_v4 }
 0x84c   :  { %2244 = vmatprep.subr.bf16.mxu0 %v2414_v0 }
 0x84e   :  { %2243 = vmatpush3.bf16.msra.mxu1 %v2497_v13 }
 0x84f   :  { %2250 = vmatprep.subr.bf16.mxu1 %v2414_v0 }
 0x918   :  { %v806_v11 = vpop.f32.mrb[6].mxu0 }
 0x919   :  { %v810_v14 = vadd.f32 %v1890_v10, %v806_v11  ;;  %v2084_v15 = vpop.f32.mrb[7].mxu0 }
 0x91b   :  { %2334 = vtanh.f32 %v810_v14  ;;  %v1892_v22 = vmul.f32 -1.442695, %v810_v14 }
 0x91c   :  { %v915_v17 = vpop.f32.mrb[6].mxu1 }
 0x91d   :  { %v919_v18 = vadd.f32 %v1894_v16, %v915_v17  ;;  %v2095_v19 = vpop.f32.mrb[7].mxu1 }
 0x91f   :  { %2336 = vtanh.f32 %v919_v18  ;;  %v1896_v23 = vmul.f32 -1.442695, %v919_v18 }
 0x920   :  { %2338 = vpow2.f32 %v1892_v22 }
 0x921   :  { %2340 = vpow2.f32 %v1896_v23 }
 0x925   :  { %v2335_v20 = vpop.eup %2334 }
 0x926   :  { %820 = vrot.lane.b32.xlu0 %v2335_v20, %s2418_s12 }
 0x929   :  { %v2337_v21 = vpop.eup %2336 }
 0x92a   :  { %929 = vrot.lane.b32.xlu1 %v2337_v21, %s2418_s12  ;;  %v2339_v24 = vpop.eup %2338 }
 0x92b   :  { %v814_v25 = vadd.f32 1.0, %v2339_v24  ;;  %v2341_v26 = vpop.eup %2340 }
 0x92c   :  { %v923_v27 = vadd.f32 1.0, %v2341_v26  ;;  %v1906_v26 = vld [vmem:[%s2826_s0 + $0xa] sm:$0x3] }
 0x92d   :  { %2342 = vrcp.f32 %v814_v25 }
 0x92e   :  { %2344 = vrcp.f32 %v923_v27 }
 0x937   :  { %v2343_v28 = vpop.eup %2342 }
 0x938   :  { %v2345_v31 = vpop.eup %2344  ;;  %v818_v34 = vmul.f32 %v2343_v28, %v2617_v58 }
 0x939   :  { %v927_v37 = vmul.f32 %v2345_v31, %v2621_v61 }
 0x998   :  { %v821_v29 = vpop.permute.xlu0 %820 }
 0x999   :  { %v823_v30 = vmul.f32 %v2343_v28, %v821_v29 }
 0x99b   :  { %825 = vrot.lane.b32.xlu0 %v823_v30, %s2417_s2  ;;  %v1910_v30 = vld [vmem:[%s2827_s1 + $0x4] sm:$0x3] }
 0x99c   :  { %v930_v32 = vpop.permute.xlu1 %929 }
 0x99d   :  { %v932_v33 = vmul.f32 %v2345_v31, %v930_v32 }
 0x99f   :  { %934 = vrot.lane.b32.xlu1 %v932_v33, %s2417_s2 }
 0xa0d   :  { %v826_v35 = vpop.permute.xlu0 %825 }
 0xa0e   :  { %v2661_v36 = vadd.f32 %v826_v35, %v818_v34 }
 0xa10   :  { %2346 = vtanh.f32 %v2661_v36 }
 0xa11   :  { %v935_v38 = vpop.permute.xlu1 %934 }
 0xa12   :  { %v2665_v39 = vadd.f32 %v935_v38, %v927_v37 }
 0xa14   :  { %2348 = vtanh.f32 %v2665_v39 }
 0xa1a   :  { %v2347_v40 = vpop.eup %2346 }
 0xa1b   :  { %831 = vrot.lane.b32.xlu0 %v2347_v40, %s2418_s12 }
 0xa1e   :  { %v2349_v41 = vpop.eup %2348 }
 0xa1f   :  { %940 = vrot.lane.b32.xlu1 %v2349_v41, %s2418_s12 }
 0xa8d   :  { %v832_v42 = vpop.permute.xlu0 %831 }
 0xa8e   :  { %v834_v43 = vmul.f32 %v2343_v28, %v832_v42 }
 0xa90   :  { %836 = vrot.lane.b32.xlu0 %v834_v43, %s2417_s2 }
 0xa91   :  { %v941_v44 = vpop.permute.xlu1 %940 }
 0xa92   :  { %v943_v45 = vmul.f32 %v2345_v31, %v941_v44 }
 0xa94   :  { %945 = vrot.lane.b32.xlu1 %v943_v45, %s2417_s2 }
 0xb02   :  { %v837_v46 = vpop.permute.xlu0 %836 }
 0xb03   :  { %1893 = vst.msk [vmem:[%s2828_s4 + $0x6] sm:$0x3] %vm59_vm0, %v837_v46  ;;  %2105 = vmatmul.mubr.msk.f32.vlgmr.msra.gmra.mrb[8].mxu0 %vm73_vm2, %v837_v46 }
 0xb04   :  { %2246 = vmatpush3.bf16.msra.mxu0 %v2469_v5  ;;  %2126 = vmatprep.mubr.msk.f32.mxu0 %vm2416_vm1, %v2415_v4 }
 0xb05   :  { %2247 = vmatprep.subr.bf16.mxu0 %v2414_v0 }
 0xb06   :  { %v946_v47 = vpop.permute.xlu1 %945 }
 0xb07   :  { %1897 = vst.msk [vmem:[%s2829_s5 + $0x8] sm:$0x3] %vm59_vm0, %v946_v47  ;;  %2116 = vmatmul.mubr.msk.f32.vlgmr.msra.gmra.mrb[8].mxu1 %vm73_vm2, %v946_v47 }
 0xb08   :  { %2249 = vmatpush3.bf16.msra.mxu0 %v2493_v12  ;;  %2252 = vmatpush3.bf16.msra.mxu1 %v2484_v9 }
 0xb09   :  { %2253 = vmatprep.subr.bf16.mxu1 %v2414_v0  ;;  %2137 = vmatprep.mubr.msk.f32.mxu1 %vm2416_vm1, %v2415_v4 }
 0xb0a   :  { %2256 = vmatprep.subr.bf16.mxu0 %v2414_v0 }
 0xb0c   :  { %2255 = vmatpush3.bf16.msra.mxu1 %v2497_v13 }
 0xb0d   :  { %2262 = vmatprep.subr.bf16.mxu1 %v2414_v0 }
 0xbd6   :  { %v1024_v49 = vpop.f32.mrb[8].mxu0 }
 0xbd7   :  { %v1028_v50 = vadd.f32 %v1898_v48, %v1024_v49  ;;  %v2106_v51 = vpop.f32.mrb[9].mxu0 }
 0xbd9   :  { %2350 = vtanh.f32 %v1028_v50  ;;  %v1900_v58 = vmul.f32 -1.442695, %v1028_v50 }
 0xbda   :  { %v1133_v53 = vpop.f32.mrb[8].mxu1 }
 0xbdb   :  { %v1137_v54 = vadd.f32 %v1902_v52, %v1133_v53  ;;  %v2117_v55 = vpop.f32.mrb[9].mxu1 }
 0xbdd   :  { %2352 = vtanh.f32 %v1137_v54  ;;  %v1904_v59 = vmul.f32 -1.442695, %v1137_v54 }
 0xbde   :  { %2354 = vpow2.f32 %v1900_v58 }
 0xbdf   :  { %2356 = vpow2.f32 %v1904_v59 }
 0xbe3   :  { %v2351_v56 = vpop.eup %2350 }
 0xbe4   :  { %1038 = vrot.lane.b32.xlu0 %v2351_v56, %s2418_s12 }
 0xbe7   :  { %v2353_v57 = vpop.eup %2352 }
 0xbe8   :  { %1147 = vrot.lane.b32.xlu1 %v2353_v57, %s2418_s12  ;;  %v2355_v60 = vpop.eup %2354 }
 0xbe9   :  { %v1032_v61 = vadd.f32 1.0, %v2355_v60  ;;  %v2357_v62 = vpop.eup %2356 }
 0xbea   :  { %v1141_v63 = vadd.f32 1.0, %v2357_v62 }
 0xbeb   :  { %2358 = vrcp.f32 %v1032_v61 }
 0xbec   :  { %2360 = vrcp.f32 %v1141_v63 }
 0xbf5   :  { %v2359_v1 = vpop.eup %2358 }
 0xbf6   :  { %v2361_v6 = vpop.eup %2360  ;;  %v1036_v10 = vmul.f32 %v2359_v1, %v2661_v36 }
 0xbf7   :  { %v1145_v15 = vmul.f32 %v2361_v6, %v2665_v39 }
 0xc56   :  { %v1039_v2 = vpop.permute.xlu0 %1038 }
 0xc57   :  { %v1041_v3 = vmul.f32 %v2359_v1, %v1039_v2 }
 0xc59   :  { %1043 = vrot.lane.b32.xlu0 %v1041_v3, %s2417_s2 }
 0xc5a   :  { %v1148_v7 = vpop.permute.xlu1 %1147 }
 0xc5b   :  { %v1150_v8 = vmul.f32 %v2361_v6, %v1148_v7 }
 0xc5d   :  { %1152 = vrot.lane.b32.xlu1 %v1150_v8, %s2417_s2 }
 0xccb   :  { %v1044_v11 = vpop.permute.xlu0 %1043 }
 0xccc   :  { %v2705_v14 = vadd.f32 %v1044_v11, %v1036_v10 }
 0xcce   :  { %2362 = vtanh.f32 %v2705_v14 }
 0xccf   :  { %v1153_v16 = vpop.permute.xlu1 %1152 }
 0xcd0   :  { %v2709_v17 = vadd.f32 %v1153_v16, %v1145_v15 }
 0xcd2   :  { %2364 = vtanh.f32 %v2709_v17 }
 0xcd8   :  { %v2363_v18 = vpop.eup %2362 }
 0xcd9   :  { %1049 = vrot.lane.b32.xlu0 %v2363_v18, %s2418_s12 }
 0xcdc   :  { %v2365_v19 = vpop.eup %2364 }
 0xcdd   :  { %1158 = vrot.lane.b32.xlu1 %v2365_v19, %s2418_s12 }
 0xd4b   :  { %v1050_v20 = vpop.permute.xlu0 %1049 }
 0xd4c   :  { %v1052_v21 = vmul.f32 %v2359_v1, %v1050_v20 }
 0xd4e   :  { %1054 = vrot.lane.b32.xlu0 %v1052_v21, %s2417_s2 }
 0xd4f   :  { %v1159_v22 = vpop.permute.xlu1 %1158 }
 0xd50   :  { %v1161_v23 = vmul.f32 %v2361_v6, %v1159_v22 }
 0xd52   :  { %1163 = vrot.lane.b32.xlu1 %v1161_v23, %s2417_s2 }
 0xdc0   :  { %v1055_v24 = vpop.permute.xlu0 %1054 }
 0xdc1   :  { %1901 = vst.msk [vmem:[%s2828_s4 + $0x8] sm:$0x3] %vm59_vm0, %v1055_v24  ;;  %2127 = vmatmul.mubr.msk.f32.vlgmr.msra.gmra.mrb[10].mxu0 %vm73_vm2, %v1055_v24 }
 0xdc2   :  { %2258 = vmatpush3.bf16.msra.mxu0 %v2469_v5  ;;  %2148 = vmatprep.mubr.msk.f32.mxu0 %vm2416_vm1, %v2415_v4 }
 0xdc3   :  { %2259 = vmatprep.subr.bf16.mxu0 %v2414_v0 }
 0xdc4   :  { %v1164_v25 = vpop.permute.xlu1 %1163 }
 0xdc5   :  { %1905 = vst.msk [vmem:[%s2829_s5 + $0x6] sm:$0x3] %vm59_vm0, %v1164_v25  ;;  %2138 = vmatmul.mubr.msk.f32.vlgmr.msra.gmra.mrb[10].mxu1 %vm73_vm2, %v1164_v25 }
 0xdc6   :  { %2261 = vmatpush3.bf16.msra.mxu0 %v2493_v12  ;;  %2264 = vmatpush3.bf16.msra.mxu1 %v2484_v9 }
 0xdc7   :  { %2265 = vmatprep.subr.bf16.mxu1 %v2414_v0  ;;  %2159 = vmatprep.mubr.msk.f32.mxu1 %vm2416_vm1, %v2415_v4 }
 0xdc8   :  { %2268 = vmatprep.subr.bf16.mxu0 %v2414_v0 }
 0xdca   :  { %2267 = vmatpush3.bf16.msra.mxu1 %v2497_v13 }
 0xdcb   :  { %2274 = vmatprep.subr.bf16.mxu1 %v2414_v0 }
 0xe94   :  { %v1242_v27 = vpop.f32.mrb[10].mxu0 }
 0xe95   :  { %v1246_v28 = vadd.f32 %v1906_v26, %v1242_v27  ;;  %v2128_v29 = vpop.f32.mrb[11].mxu0 }
 0xe97   :  { %2366 = vtanh.f32 %v1246_v28  ;;  %v1908_v36 = vmul.f32 -1.442695, %v1246_v28 }
 0xe98   :  { %v1351_v31 = vpop.f32.mrb[10].mxu1 }
 0xe99   :  { %v1355_v32 = vadd.f32 %v1910_v30, %v1351_v31  ;;  %v2139_v33 = vpop.f32.mrb[11].mxu1 }
 0xe9b   :  { %2368 = vtanh.f32 %v1355_v32  ;;  %v1912_v37 = vmul.f32 -1.442695, %v1355_v32 }
 0xe9c   :  { %2370 = vpow2.f32 %v1908_v36 }
 0xe9d   :  { %2372 = vpow2.f32 %v1912_v37 }
 0xea1   :  { %v2367_v34 = vpop.eup %2366 }
 0xea2   :  { %1256 = vrot.lane.b32.xlu0 %v2367_v34, %s2418_s12  ;;  %v1922_v34 = vld [vmem:[%s2826_s0 + $0xe] sm:$0x3] }
 0xea5   :  { %v2369_v35 = vpop.eup %2368 }
 0xea6   :  { %1365 = vrot.lane.b32.xlu1 %v2369_v35, %s2418_s12  ;;  %v2371_v38 = vpop.eup %2370 }
 0xea7   :  { %v1250_v39 = vadd.f32 1.0, %v2371_v38  ;;  %v2373_v40 = vpop.eup %2372  ;;  %v1713_v38 = vld [vmem:[%s2827_s1] sm:$0x3] }
 0xea8   :  { %v1359_v41 = vadd.f32 1.0, %v2373_v40 }
 0xea9   :  { %2374 = vrcp.f32 %v1250_v39 }
 0xeaa   :  { %2376 = vrcp.f32 %v1359_v41 }
 0xeb3   :  { %v2375_v42 = vpop.eup %2374 }
 0xeb4   :  { %v2377_v45 = vpop.eup %2376  ;;  %v1254_v48 = vmul.f32 %v2375_v42, %v2705_v14 }
 0xeb5   :  { %v1363_v51 = vmul.f32 %v2377_v45, %v2709_v17 }
 0xf14   :  { %v1257_v43 = vpop.permute.xlu0 %1256 }
 0xf15   :  { %v1259_v44 = vmul.f32 %v2375_v42, %v1257_v43 }
 0xf17   :  { %1261 = vrot.lane.b32.xlu0 %v1259_v44, %s2417_s2 }
 0xf18   :  { %v1366_v46 = vpop.permute.xlu1 %1365 }
 0xf19   :  { %v1368_v47 = vmul.f32 %v2377_v45, %v1366_v46 }
 0xf1b   :  { %1370 = vrot.lane.b32.xlu1 %v1368_v47, %s2417_s2 }
 0xf89   :  { %v1262_v49 = vpop.permute.xlu0 %1261 }
 0xf8a   :  { %v1264_v50 = vadd.f32 %v1262_v49, %v1254_v48 }
 0xf8c   :  { %2378 = vtanh.f32 %v1264_v50 }
 0xf8d   :  { %v1371_v52 = vpop.permute.xlu1 %1370 }
 0xf8e   :  { %v1373_v53 = vadd.f32 %v1371_v52, %v1363_v51 }
 0xf90   :  { %2380 = vtanh.f32 %v1373_v53 }
 0xf96   :  { %v2379_v54 = vpop.eup %2378 }
 0xf97   :  { %1267 = vrot.lane.b32.xlu0 %v2379_v54, %s2418_s12 }
 0xf9a   :  { %v2381_v55 = vpop.eup %2380 }
 0xf9b   :  { %1376 = vrot.lane.b32.xlu1 %v2381_v55, %s2418_s12 }
0x1009   :  { %v1268_v56 = vpop.permute.xlu0 %1267 }
0x100a   :  { %v1270_v57 = vmul.f32 %v2375_v42, %v1268_v56 }
0x100c   :  { %1272 = vrot.lane.b32.xlu0 %v1270_v57, %s2417_s2 }
0x100d   :  { %v1377_v58 = vpop.permute.xlu1 %1376 }
0x100e   :  { %v1379_v59 = vmul.f32 %v2377_v45, %v1377_v58 }
0x1010   :  { %1381 = vrot.lane.b32.xlu1 %v1379_v59, %s2417_s2 }
0x107e   :  { %v1273_v60 = vpop.permute.xlu0 %1272 }
0x107f   :  { %1909 = vst.msk [vmem:[%s2828_s4 + $0xa] sm:$0x3] %vm59_vm0, %v1273_v60  ;;  %2149 = vmatmul.mubr.msk.f32.vlgmr.msra.gmra.mrb[12].mxu0 %vm73_vm2, %v1273_v60 }
0x1080   :  { %2270 = vmatpush3.bf16.msra.mxu0 %v2469_v5  ;;  %2170 = vmatprep.mubr.msk.f32.mxu0 %vm2416_vm1, %v2415_v4  ;;  %v1914_v5 = vld [vmem:[%s2826_s0 + $0xc] sm:$0x3]  ;;  %s2419_s0 = smov 96  }
0x1081   :  { %2271 = vmatprep.subr.bf16.mxu0 %v2414_v0 }
0x1082   :  { %v1382_v61 = vpop.permute.xlu1 %1381 }
0x1083   :  { %1913 = vst.msk [vmem:[%s2829_s5 + $0x4] sm:$0x3] %vm59_vm0, %v1382_v61  ;;  %2160 = vmatmul.mubr.msk.f32.vlgmr.msra.gmra.mrb[12].mxu1 %vm73_vm2, %v1382_v61 }
0x1084   :  { %2273 = vmatpush3.bf16.msra.mxu0 %v2493_v12  ;;  %2276 = vmatpush3.bf16.msra.mxu1 %v2484_v9  ;;  %v1918_v12 = vld [vmem:[%s2827_s1 + $0x2] sm:$0x3] }
0x1085   :  { %2277 = vmatprep.subr.bf16.mxu1 %v2414_v0  ;;  %2181 = vmatprep.mubr.msk.f32.mxu1 %vm2416_vm1, %v2415_v4 }
0x1088   :  { %2279 = vmatpush3.bf16.msra.mxu1 %v2497_v13 }
0x1152   :  { %v1460_v62 = vpop.f32.mrb[12].mxu0 }
0x1153   :  { %v1464_v63 = vadd.f32 %v1914_v5, %v1460_v62  ;;  %v2150_v1 = vpop.f32.mrb[13].mxu0 }
0x1155   :  { %2382 = vtanh.f32 %v1464_v63  ;;  %v1916_v13 = vmul.f32 -1.442695, %v1464_v63 }
0x1156   :  { %v1569_v9 = vpop.f32.mrb[12].mxu1 }
0x1157   :  { %v1573_v2 = vadd.f32 %v1918_v12, %v1569_v9  ;;  %v2161_v0 = vpop.f32.mrb[13].mxu1 }
0x1159   :  { %2384 = vtanh.f32 %v1573_v2  ;;  %v1920_v6 = vmul.f32 -1.442695, %v1573_v2 }
0x115a   :  { %2386 = vpow2.f32 %v1916_v13 }
0x115b   :  { %2388 = vpow2.f32 %v1920_v6 }
0x115f   :  { %v2383_v3 = vpop.eup %2382 }
0x1160   :  { %1474 = vrot.lane.b32.xlu0 %v2383_v3, %s2418_s12 }
0x1163   :  { %v2385_v4 = vpop.eup %2384 }
0x1164   :  { %1583 = vrot.lane.b32.xlu1 %v2385_v4, %s2418_s12  ;;  %v2387_v7 = vpop.eup %2386 }
0x1165   :  { %v1468_v8 = vadd.f32 1.0, %v2387_v7  ;;  %v2389_v10 = vpop.eup %2388 }
0x1166   :  { %v1577_v11 = vadd.f32 1.0, %v2389_v10 }
0x1167   :  { %2390 = vrcp.f32 %v1468_v8 }
0x1168   :  { %2392 = vrcp.f32 %v1577_v11 }
0x1171   :  { %v2391_v14 = vpop.eup %2390 }
0x1172   :  { %v2393_v17 = vpop.eup %2392  ;;  %v1472_v20 = vmul.f32 %v2391_v14, %v1264_v50 }
0x1173   :  { %v1581_v23 = vmul.f32 %v2393_v17, %v1373_v53 }
0x11d2   :  { %v1475_v15 = vpop.permute.xlu0 %1474 }
0x11d3   :  { %v1477_v16 = vmul.f32 %v2391_v14, %v1475_v15 }
0x11d5   :  { %1479 = vrot.lane.b32.xlu0 %v1477_v16, %s2417_s2 }
0x11d6   :  { %v1584_v18 = vpop.permute.xlu1 %1583 }
0x11d7   :  { %v1586_v19 = vmul.f32 %v2393_v17, %v1584_v18 }
0x11d9   :  { %1588 = vrot.lane.b32.xlu1 %v1586_v19, %s2417_s2 }
0x1247   :  { %v1480_v21 = vpop.permute.xlu0 %1479 }
0x1248   :  { %v1482_v22 = vadd.f32 %v1480_v21, %v1472_v20 }
0x124a   :  { %2394 = vtanh.f32 %v1482_v22 }
0x124b   :  { %v1589_v24 = vpop.permute.xlu1 %1588 }
0x124c   :  { %v1591_v25 = vadd.f32 %v1589_v24, %v1581_v23 }
0x124e   :  { %2396 = vtanh.f32 %v1591_v25 }
0x1254   :  { %v2395_v26 = vpop.eup %2394 }
0x1255   :  { %1485 = vrot.lane.b32.xlu0 %v2395_v26, %s2418_s12 }
0x1258   :  { %v2397_v27 = vpop.eup %2396 }
0x1259   :  { %1594 = vrot.lane.b32.xlu1 %v2397_v27, %s2418_s12 }
0x12c7   :  { %v1486_v28 = vpop.permute.xlu0 %1485 }
0x12c8   :  { %v1488_v29 = vmul.f32 %v2391_v14, %v1486_v28 }
0x12ca   :  { %1490 = vrot.lane.b32.xlu0 %v1488_v29, %s2417_s2 }
0x12cb   :  { %v1595_v30 = vpop.permute.xlu1 %1594 }
0x12cc   :  { %v1597_v31 = vmul.f32 %v2393_v17, %v1595_v30 }
0x12ce   :  { %1599 = vrot.lane.b32.xlu1 %v1597_v31, %s2417_s2 }
0x133c   :  { %v1491_v32 = vpop.permute.xlu0 %1490 }
0x133d   :  { %1917 = vst.msk [vmem:[%s2828_s4 + $0xc] sm:$0x3] %vm59_vm0, %v1491_v32  ;;  %2171 = vmatmul.mubr.msk.f32.vlgmr.msra.gmra.mrb[14].mxu0 %vm73_vm2, %v1491_v32 }
0x1340   :  { %v1600_v33 = vpop.permute.xlu1 %1599 }
0x1341   :  { %1921 = vst.msk [vmem:[%s2829_s5 + $0x2] sm:$0x3] %vm59_vm0, %v1600_v33  ;;  %2182 = vmatmul.mubr.msk.f32.vlgmr.msra.gmra.mrb[14].mxu1 %vm73_vm2, %v1600_v33 }
0x1410   :  { %v1678_v35 = vpop.f32.mrb[14].mxu0 }
0x1411   :  { %v1682_v36 = vadd.f32 %v1922_v34, %v1678_v35  ;;  %v2172_v37 = vpop.f32.mrb[15].mxu0 }
0x1413   :  { %2398 = vtanh.f32 %v1682_v36  ;;  %v1924_v44 = vmul.f32 -1.442695, %v1682_v36 }
0x1414   :  { %v1786_v39 = vpop.f32.mrb[14].mxu1 }
0x1415   :  { %v1790_v40 = vadd.f32 %v1786_v39, %v1713_v38  ;;  %v2183_v41 = vpop.f32.mrb[15].mxu1 }
0x1417   :  { %2400 = vtanh.f32 %v1790_v40  ;;  %v1927_v45 = vmul.f32 -1.442695, %v1790_v40 }
0x1418   :  { %2402 = vpow2.f32 %v1924_v44 }
0x1419   :  { %2404 = vpow2.f32 %v1927_v45 }
0x141d   :  { %v2399_v42 = vpop.eup %2398 }
0x141e   :  { %1692 = vrot.lane.b32.xlu0 %v2399_v42, %s2418_s12 }
0x1421   :  { %v2401_v43 = vpop.eup %2400 }
0x1422   :  { %1800 = vrot.lane.b32.xlu1 %v2401_v43, %s2418_s12  ;;  %v2403_v46 = vpop.eup %2402 }
0x1423   :  { %v1686_v47 = vadd.f32 1.0, %v2403_v46  ;;  %v2405_v48 = vpop.eup %2404 }
0x1424   :  { %v1794_v49 = vadd.f32 1.0, %v2405_v48 }
0x1425   :  { %2406 = vrcp.f32 %v1686_v47 }
0x1426   :  { %2408 = vrcp.f32 %v1794_v49 }
0x142f   :  { %v2407_v50 = vpop.eup %2406 }
0x1430   :  { %v2409_v53 = vpop.eup %2408  ;;  %v1690_v56 = vmul.f32 %v2407_v50, %v1482_v22 }
0x1431   :  { %v1798_v59 = vmul.f32 %v2409_v53, %v1591_v25 }
0x1490   :  { %v1693_v51 = vpop.permute.xlu0 %1692 }
0x1491   :  { %v1695_v52 = vmul.f32 %v2407_v50, %v1693_v51 }
0x1493   :  { %1697 = vrot.lane.b32.xlu0 %v1695_v52, %s2417_s2 }
0x1494   :  { %v1801_v54 = vpop.permute.xlu1 %1800 }
0x1495   :  { %v1803_v55 = vmul.f32 %v2409_v53, %v1801_v54 }
0x1497   :  { %1805 = vrot.lane.b32.xlu1 %v1803_v55, %s2417_s2 }
0x1505   :  { %v1698_v57 = vpop.permute.xlu0 %1697 }
0x1506   :  { %v1700_v58 = vadd.f32 %v1698_v57, %v1690_v56 }
0x1508   :  { %2410 = vtanh.f32 %v1700_v58 }
0x1509   :  { %v1806_v60 = vpop.permute.xlu1 %1805 }
0x150a   :  { %v1808_v61 = vadd.f32 %v1806_v60, %v1798_v59 }
0x150c   :  { %2412 = vtanh.f32 %v1808_v61 }
0x1512   :  { %v2411_v5 = vpop.eup %2410 }
0x1513   :  { %1703 = vrot.lane.b32.xlu0 %v2411_v5, %s2418_s12 }
0x1516   :  { %v2413_v62 = vpop.eup %2412 }
0x1517   :  { %1811 = vrot.lane.b32.xlu1 %v2413_v62, %s2418_s12 }
0x1585   :  { %v1704_v63 = vpop.permute.xlu0 %1703 }
0x1586   :  { %v1706_v1 = vmul.f32 %v2407_v50, %v1704_v63 }
0x1588   :  { %1708 = vrot.lane.b32.xlu0 %v1706_v1, %s2417_s2 }
0x1589   :  { %v1812_v12 = vpop.permute.xlu1 %1811 }
0x158a   :  { %v1814_v9 = vmul.f32 %v2409_v53, %v1812_v12 }
0x158c   :  { %1816 = vrot.lane.b32.xlu1 %v1814_v9, %s2417_s2  ;;  %1822 = vrot.lane.b32.xlu0 %v1700_v58, %s2419_s0 }
0x1590   :  { %1828 = vrot.lane.b32.xlu1 %v1808_v61, %s2419_s0 }
0x15fa   :  { %v1709_v2 = vpop.permute.xlu0 %1708 }
0x15fb   :  { %1925 = vst.msk [vmem:[%s2828_s4 + $0xe] sm:$0x3] %vm59_vm0, %v1709_v2  ;;  %1820 = vst.msk [vmem:[#allocation2] sm:$0x3] %vm59_vm0, %v1709_v2 }
0x15fe   :  { %v1817_v0 = vpop.permute.xlu1 %1816  ;;  %v1823_v3 = vpop.permute.xlu0 %1822 }
0x15ff   :  { %1819 = vst.msk [vmem:[%s2829_s5] sm:$0x3] %vm59_vm0, %v1817_v0  ;;  %1826 = vst.msk [vmem:[#allocation4] sm:$0x3] %vm59_vm0, %v1817_v0 }
0x1600   :  { %1825 = vst.msk [vmem:[#allocation3] sm:$0x3] %vm59_vm0, %v1823_v3 }
0x1602   :  { %v1829_v4 = vpop.permute.xlu1 %1828 }
0x1603   :  { %1831 = vst.msk [vmem:[#allocation5] sm:$0x3] %vm59_vm0, %v1829_v4 }

</bundles_post_ra>
